<compile_context>
chip_gen: v7x
topology: tpu7x:2x2x1
jax: 0.10.0
libtpu: 0.0.40
codegen_flags: <defaults>
</compile_context>

<pallas_src>
import functools

import jax
import jax.numpy as jnp
from jax.experimental import pallas as pl
from jax.experimental.pallas import tpu as pltpu


def _round_up(x, m):
    return (x + m - 1) // m * m


# ------------------------------ Pallas kernel ------------------------------ #

def _residual_kernel(x_ref, w3_ref, w1_ref, o_ref, relu_ref, patches_ref, *,
                     wp, s, margin, nb, cin, mxu_dtype):
    """out = x + W1 @ relu( W3 @ im2col(relu(x)) ), `nb` images per grid step.

    x_ref      : (nb, Cin, S_in) f32   padded images, spatial flattened on lanes
    w3_ref     : (Cmid, 9*Cin)   bf16  3x3 conv weights, cols ordered (dh, dw, cin)
    w1_ref     : (Cout, Cmid)    bf16  1x1 conv weights
    o_ref      : (nb, Cout, S)   f32   lane-dense output slab (halo cut outside)
    relu_ref   : (nb, Cin, S_in) bf16  scratch: relu(x) cast once
    patches_ref: (9*Cin, nb*S)   bf16  scratch: im2col matrix for the 3x3 GEMM
    """
    # Single fused ReLU + bf16 cast pass over the whole input block.
    relu_ref[...] = jnp.maximum(x_ref[...], 0.0).astype(mxu_dtype)

    # In-VMEM im2col: nine static lane-offset slices per image, written
    # straight into the preallocated patches scratch (no concat, no temps).
    for b in range(nb):
        for dh in range(3):
            for dw in range(3):
                start = margin + (dh - 1) * wp + (dw - 1)
                row0 = (dh * 3 + dw) * cin
                patches_ref[row0:row0 + cin, b * s:(b + 1) * s] = \
                    relu_ref[b, :, start:start + s]

    # 3x3 conv as ONE GEMM over all nb images (K = 9*Cin, N = nb*S), f32 acc.
    h = jnp.dot(w3_ref[...], patches_ref[...],
                preferred_element_type=jnp.float32)          # (Cmid, nb*S) f32
    h = jnp.maximum(h, 0.0).astype(mxu_dtype)                # ReLU, single cast

    # 1x1 conv as a GEMM.
    y = jnp.dot(w1_ref[...], h,
                preferred_element_type=jnp.float32)          # (Cout, nb*S) f32

    # Residual add with the ORIGINAL (un-ReLU'd, f32) x; never leaves VMEM.
    for b in range(nb):
        x_center = x_ref[b, :, margin:margin + s]            # (Cin==Cout, S) f32
        o_ref[b] = (x_center + y[:, b * s:(b + 1) * s]).astype(o_ref.dtype)


# ------------------------------ Host wrappers ------------------------------ #

def preprocess_params(w3_oihw, w1_oihw, mxu_dtype=jnp.bfloat16):
    """One-time weight prep: PyTorch OIHW -> GEMM matrices (not per call)."""
    cmid, cin, kh, kw = w3_oihw.shape
    assert (kh, kw) == (3, 3)
    cout, cmid2, k1h, k1w = w1_oihw.shape
    assert (k1h, k1w) == (1, 1) and cmid2 == cmid
    # (Cmid, Cin, 3, 3) -> (Cmid, [dh, dw, cin]): matches tap stacking order.
    w3_mat = jnp.transpose(w3_oihw, (0, 2, 3, 1)).reshape(cmid, 9 * cin)
    w1_mat = w1_oihw.reshape(cout, cmid)
    return w3_mat.astype(mxu_dtype), w1_mat.astype(mxu_dtype)


def residual_forward(x_nchw, w3_mat, w1_mat, *, vmem_budget_bytes=24 << 20):
    """Residual block forward. x: (N, C, H, W) f32, NCHW in/out (PyTorch layout)."""
    n, cin, h, w = x_nchw.shape
    cmid = w3_mat.shape[0]
    cout = w1_mat.shape[0]
    assert cout == cin, "residual add requires out_channels == in_channels"

    hp, wp = h + 2, w + 2                  # conv padding = 1
    l = hp * wp                            # flattened padded spatial size
    s = _round_up(l, 128)                  # lane-dense output slab per image
    margin = 2 * wp                        # >= wp + 1, and a whole number of rows
    m_bot = -(-(wp + 1 + (s - l)) // wp)   # ceil: bottom rows covering max tap end
    rows = hp + 2 + m_bot
    s_in = rows * wp                       # per-image input slab length
    assert margin - (wp + 1) >= 0 and margin + (wp + 1) + s <= s_in

    # --- choose images-per-grid-step against a per-generation VMEM budget ---
    per_img = (2 * cin * s_in * 4          # double-buffered input block
               + 2 * cout * s * 4          # double-buffered output block
               + cin * s_in * 2            # bf16 relu scratch
               + 9 * cin * s * 2)          # bf16 patches scratch
    fixed = (cmid * 9 * cin + cout * cmid) * 2 * 2
    max_b = max(1, (vmem_budget_bytes - fixed) // per_img)
    divisors = [b for b in range(1, n + 1) if n % b == 0 and b <= max_b] or [1]
    pipelined = [b for b in divisors if n // b >= 4]   # >=2 steps per v7x core
    nb = max(pipelined) if pipelined else max(divisors)
    vmem_limit = min(60 << 20, max(32 << 20, int((fixed + nb * per_img) * 2)))

    # --- single host-side pad pass: conv halo + slab margin fused into one ---
    # H: 1 (conv) + 2 margin rows on top, 1 (conv) + m_bot rows on bottom; W: 1/1.
    x_in = jnp.pad(x_nchw, ((0, 0), (0, 0), (3, 1 + m_bot), (1, 1)))
    x_in = x_in.reshape(n, cin, s_in)      # (N, Cin, S_in), image starts at `margin`

    kernel = functools.partial(_residual_kernel, wp=wp, s=s, margin=margin,
                               nb=nb, cin=cin, mxu_dtype=w3_mat.dtype)
    flops = 2 * (9 * cin * cmid + cmid * cout) * n * s
    bytes_accessed = (n * cin * s_in + n * cout * s) * 4 \
        + (cmid * 9 * cin + cout * cmid) * 2

    out_slab = pl.pallas_call(
        kernel,
        out_shape=jax.ShapeDtypeStruct((n, cout, s), jnp.float32),
        grid=(n // nb,),                                   # nb images per step
        in_specs=[
            pl.BlockSpec((nb, cin, s_in), lambda b: (b, 0, 0)),
            pl.BlockSpec((cmid, 9 * cin), lambda b: (0, 0)),
            pl.BlockSpec((cout, cmid), lambda b: (0, 0)),
        ],
        out_specs=pl.BlockSpec((nb, cout, s), lambda b: (b, 0, 0)),
        scratch_shapes=[
            pltpu.VMEM((nb, cin, s_in), w3_mat.dtype),     # relu(x) bf16 slab
            pltpu.VMEM((9 * cin, nb * s), w3_mat.dtype),   # im2col patches
        ],
        compiler_params=pltpu.CompilerParams(
            dimension_semantics=("parallel",),             # megacore on v7x
            vmem_limit_bytes=vmem_limit),
        cost_estimate=pl.CostEstimate(flops=flops, transcendentals=0,
                                      bytes_accessed=bytes_accessed),
    )(x_in, w3_mat, w1_mat)

    # Drop alignment padding + halo, restore NCHW image (single output pass).
    out = out_slab[:, :, :l].reshape(n, cout, hp, wp)[:, :, 1:1 + h, 1:1 + w]
    return out


# Pure-JAX reference (cross-correlation, same semantics as torch.nn.Conv2d).
def residual_ref(x, w3, w1):
    h = jax.nn.relu(x)
    h = jax.lax.conv_general_dilated(
        h, w3, window_strides=(1, 1), padding=((1, 1), (1, 1)),
        dimension_numbers=("NCHW", "OIHW", "NCHW"))
    h = jax.nn.relu(h)
    h = jax.lax.conv_general_dilated(
        h, w1, window_strides=(1, 1), padding="VALID",
        dimension_numbers=("NCHW", "OIHW", "NCHW"))
    return x + h


# ---------------------------------- main ----------------------------------- #

if __name__ == "__main__":
    key = jax.random.PRNGKey(0)
    k1, k2, kx = jax.random.split(key, 3)

    batch, num_hiddens, num_residual_hiddens, H, W = 8, 32, 16, 16, 16
    in_channels = num_hiddens   # residual add requires matching channel counts

    # PyTorch-default-style uniform(+/- 1/sqrt(fan_in)) init, bias=False convs.
    b3 = 1.0 / ((in_channels * 9) ** 0.5)
    w3 = jax.random.uniform(k1, (num_residual_hiddens, in_channels, 3, 3),
                            jnp.float32, -b3, b3)
    b1 = 1.0 / (num_residual_hiddens ** 0.5)
    w1 = jax.random.uniform(k2, (num_hiddens, num_residual_hiddens, 1, 1),
                            jnp.float32, -b1, b1)
    x = jax.random.normal(kx, (batch, in_channels, H, W), jnp.float32)

    w3_mat, w1_mat = preprocess_params(w3, w1)      # one-time weight transform
    out = jax.jit(residual_forward)(x, w3_mat, w1_mat)
    out = jax.block_until_ready(out)

    assert out.shape == (batch, num_hiddens, H, W), out.shape
    assert out.dtype == jnp.float32

    ref = residual_ref(x, w3, w1)
    max_err = float(jnp.max(jnp.abs(out - ref)))
    assert max_err < 5e-2, f"max abs err {max_err}"   # bf16-MXU tolerance
    print("KERNEL_OK")
</pallas_src>

<mosaic_0001>
module attributes {stable_mosaic.version = 11 : i64} {
  func.func @_residual_kernel(%arg0: i32, %arg1: memref<2x32x450xf32, #tpu.memory_space<vmem>>, %arg2: memref<16x288xbf16, #tpu.memory_space<vmem>>, %arg3: memref<32x16xbf16, #tpu.memory_space<vmem>>, %arg4: memref<2x32x384xf32, #tpu.memory_space<vmem>>, %arg5: memref<2x32x450xbf16, #tpu.memory_space<vmem>>, %arg6: memref<288x768xbf16, #tpu.memory_space<vmem>>) attributes {dimension_semantics = [#tpu.dimension_semantics<parallel>], iteration_bounds = array<i64: 4>, scalar_prefetch = 0 : i64, scratch_operands = 2 : i64, tpu.core_type = #tpu.core_type<tc>, window_params = [{transform_indices = @transform_0, window_bounds = array<i64: 2, 32, 450>}, {pipeline_mode = #tpu.pipeline_mode<synchronous>, transform_indices = @transform_1, window_bounds = array<i64: 16, 288>}, {pipeline_mode = #tpu.pipeline_mode<synchronous>, transform_indices = @transform_2, window_bounds = array<i64: 32, 16>}, {transform_indices = @transform_3, window_bounds = array<i64: 2, 32, 384>}]} {
    %c0 = arith.constant 0 : index
    %c0_0 = arith.constant 0 : index
    %c0_1 = arith.constant 0 : index
    %0 = vector.load %arg1[%c0, %c0_0, %c0_1] : memref<2x32x450xf32, #tpu.memory_space<vmem>>, vector<2x32x450xf32>
    %cst = arith.constant 0.000000e+00 : f32
    %1 = vector.broadcast %cst : f32 to vector<2x32x450xf32>
    %2 = arith.maximumf %0, %1 : vector<2x32x450xf32>
    %3 = arith.truncf %2 : vector<2x32x450xf32> to vector<2x32x450xbf16>
    %c0_2 = arith.constant 0 : index
    %c0_3 = arith.constant 0 : index
    %c0_4 = arith.constant 0 : index
    %4 = vector.load %arg5[%c0_2, %c0_3, %c0_4] : memref<2x32x450xbf16, #tpu.memory_space<vmem>>, vector<2x32x450xbf16>
    tpu.vector_store %arg5[%c0_2, %c0_3, %c0_4], %3 {strides = array<i32>} : memref<2x32x450xbf16, #tpu.memory_space<vmem>>, vector<2x32x450xbf16>,
    %c0_5 = arith.constant 0 : index
    %c0_6 = arith.constant 0 : index
    %c17 = arith.constant 17 : index
    %5 = vector.load %arg5[%c0_5, %c0_6, %c17] : memref<2x32x450xbf16, #tpu.memory_space<vmem>>, vector<1x32x384xbf16>
    %6 = vector.shape_cast %5 : vector<1x32x384xbf16> to vector<32x384xbf16>
    %c0_7 = arith.constant 0 : index
    %c0_8 = arith.constant 0 : index
    %7 = vector.load %arg6[%c0_7, %c0_8] : memref<288x768xbf16, #tpu.memory_space<vmem>>, vector<32x384xbf16>
    tpu.vector_store %arg6[%c0_7, %c0_8], %6 {strides = array<i32>} : memref<288x768xbf16, #tpu.memory_space<vmem>>, vector<32x384xbf16>,
    %c0_9 = arith.constant 0 : index
    %c0_10 = arith.constant 0 : index
    %c18 = arith.constant 18 : index
    %8 = vector.load %arg5[%c0_9, %c0_10, %c18] : memref<2x32x450xbf16, #tpu.memory_space<vmem>>, vector<1x32x384xbf16>
    %9 = vector.shape_cast %8 : vector<1x32x384xbf16> to vector<32x384xbf16>
    %c32 = arith.constant 32 : index
    %c0_11 = arith.constant 0 : index
    %10 = vector.load %arg6[%c32, %c0_11] : memref<288x768xbf16, #tpu.memory_space<vmem>>, vector<32x384xbf16>
    tpu.vector_store %arg6[%c32, %c0_11], %9 {strides = array<i32>} : memref<288x768xbf16, #tpu.memory_space<vmem>>, vector<32x384xbf16>,
    %c0_12 = arith.constant 0 : index
    %c0_13 = arith.constant 0 : index
    %c19 = arith.constant 19 : index
    %11 = vector.load %arg5[%c0_12, %c0_13, %c19] : memref<2x32x450xbf16, #tpu.memory_space<vmem>>, vector<1x32x384xbf16>
    %12 = vector.shape_cast %11 : vector<1x32x384xbf16> to vector<32x384xbf16>
    %c64 = arith.constant 64 : index
    %c0_14 = arith.constant 0 : index
    %13 = vector.load %arg6[%c64, %c0_14] : memref<288x768xbf16, #tpu.memory_space<vmem>>, vector<32x384xbf16>
    tpu.vector_store %arg6[%c64, %c0_14], %12 {strides = array<i32>} : memref<288x768xbf16, #tpu.memory_space<vmem>>, vector<32x384xbf16>,
    %c0_15 = arith.constant 0 : index
    %c0_16 = arith.constant 0 : index
    %c35 = arith.constant 35 : index
    %14 = vector.load %arg5[%c0_15, %c0_16, %c35] : memref<2x32x450xbf16, #tpu.memory_space<vmem>>, vector<1x32x384xbf16>
    %15 = vector.shape_cast %14 : vector<1x32x384xbf16> to vector<32x384xbf16>
    %c96 = arith.constant 96 : index
    %c0_17 = arith.constant 0 : index
    %16 = vector.load %arg6[%c96, %c0_17] : memref<288x768xbf16, #tpu.memory_space<vmem>>, vector<32x384xbf16>
    tpu.vector_store %arg6[%c96, %c0_17], %15 {strides = array<i32>} : memref<288x768xbf16, #tpu.memory_space<vmem>>, vector<32x384xbf16>,
    %c0_18 = arith.constant 0 : index
    %c0_19 = arith.constant 0 : index
    %c36 = arith.constant 36 : index
    %17 = vector.load %arg5[%c0_18, %c0_19, %c36] : memref<2x32x450xbf16, #tpu.memory_space<vmem>>, vector<1x32x384xbf16>
    %18 = vector.shape_cast %17 : vector<1x32x384xbf16> to vector<32x384xbf16>
    %c128 = arith.constant 128 : index
    %c0_20 = arith.constant 0 : index
    %19 = vector.load %arg6[%c128, %c0_20] : memref<288x768xbf16, #tpu.memory_space<vmem>>, vector<32x384xbf16>
    tpu.vector_store %arg6[%c128, %c0_20], %18 {strides = array<i32>} : memref<288x768xbf16, #tpu.memory_space<vmem>>, vector<32x384xbf16>,
    %c0_21 = arith.constant 0 : index
    %c0_22 = arith.constant 0 : index
    %c37 = arith.constant 37 : index
    %20 = vector.load %arg5[%c0_21, %c0_22, %c37] : memref<2x32x450xbf16, #tpu.memory_space<vmem>>, vector<1x32x384xbf16>
    %21 = vector.shape_cast %20 : vector<1x32x384xbf16> to vector<32x384xbf16>
    %c160 = arith.constant 160 : index
    %c0_23 = arith.constant 0 : index
    %22 = vector.load %arg6[%c160, %c0_23] : memref<288x768xbf16, #tpu.memory_space<vmem>>, vector<32x384xbf16>
    tpu.vector_store %arg6[%c160, %c0_23], %21 {strides = array<i32>} : memref<288x768xbf16, #tpu.memory_space<vmem>>, vector<32x384xbf16>,
    %c0_24 = arith.constant 0 : index
    %c0_25 = arith.constant 0 : index
    %c53 = arith.constant 53 : index
    %23 = vector.load %arg5[%c0_24, %c0_25, %c53] : memref<2x32x450xbf16, #tpu.memory_space<vmem>>, vector<1x32x384xbf16>
    %24 = vector.shape_cast %23 : vector<1x32x384xbf16> to vector<32x384xbf16>
    %c192 = arith.constant 192 : index
    %c0_26 = arith.constant 0 : index
    %25 = vector.load %arg6[%c192, %c0_26] : memref<288x768xbf16, #tpu.memory_space<vmem>>, vector<32x384xbf16>
    tpu.vector_store %arg6[%c192, %c0_26], %24 {strides = array<i32>} : memref<288x768xbf16, #tpu.memory_space<vmem>>, vector<32x384xbf16>,
    %c0_27 = arith.constant 0 : index
    %c0_28 = arith.constant 0 : index
    %c54 = arith.constant 54 : index
    %26 = vector.load %arg5[%c0_27, %c0_28, %c54] : memref<2x32x450xbf16, #tpu.memory_space<vmem>>, vector<1x32x384xbf16>
    %27 = vector.shape_cast %26 : vector<1x32x384xbf16> to vector<32x384xbf16>
    %c224 = arith.constant 224 : index
    %c0_29 = arith.constant 0 : index
    %28 = vector.load %arg6[%c224, %c0_29] : memref<288x768xbf16, #tpu.memory_space<vmem>>, vector<32x384xbf16>
    tpu.vector_store %arg6[%c224, %c0_29], %27 {strides = array<i32>} : memref<288x768xbf16, #tpu.memory_space<vmem>>, vector<32x384xbf16>,
    %c0_30 = arith.constant 0 : index
    %c0_31 = arith.constant 0 : index
    %c55 = arith.constant 55 : index
    %29 = vector.load %arg5[%c0_30, %c0_31, %c55] : memref<2x32x450xbf16, #tpu.memory_space<vmem>>, vector<1x32x384xbf16>
    %30 = vector.shape_cast %29 : vector<1x32x384xbf16> to vector<32x384xbf16>
    %c256 = arith.constant 256 : index
    %c0_32 = arith.constant 0 : index
    %31 = vector.load %arg6[%c256, %c0_32] : memref<288x768xbf16, #tpu.memory_space<vmem>>, vector<32x384xbf16>
    tpu.vector_store %arg6[%c256, %c0_32], %30 {strides = array<i32>} : memref<288x768xbf16, #tpu.memory_space<vmem>>, vector<32x384xbf16>,
    %c1 = arith.constant 1 : index
    %c0_33 = arith.constant 0 : index
    %c17_34 = arith.constant 17 : index
    %32 = vector.load %arg5[%c1, %c0_33, %c17_34] : memref<2x32x450xbf16, #tpu.memory_space<vmem>>, vector<1x32x384xbf16>
    %33 = vector.shape_cast %32 : vector<1x32x384xbf16> to vector<32x384xbf16>
    %c0_35 = arith.constant 0 : index
    %c384 = arith.constant 384 : index
    %34 = vector.load %arg6[%c0_35, %c384] : memref<288x768xbf16, #tpu.memory_space<vmem>>, vector<32x384xbf16>
    tpu.vector_store %arg6[%c0_35, %c384], %33 {strides = array<i32>} : memref<288x768xbf16, #tpu.memory_space<vmem>>, vector<32x384xbf16>,
    %c1_36 = arith.constant 1 : index
    %c0_37 = arith.constant 0 : index
    %c18_38 = arith.constant 18 : index
    %35 = vector.load %arg5[%c1_36, %c0_37, %c18_38] : memref<2x32x450xbf16, #tpu.memory_space<vmem>>, vector<1x32x384xbf16>
    %36 = vector.shape_cast %35 : vector<1x32x384xbf16> to vector<32x384xbf16>
    %c32_39 = arith.constant 32 : index
    %c384_40 = arith.constant 384 : index
    %37 = vector.load %arg6[%c32_39, %c384_40] : memref<288x768xbf16, #tpu.memory_space<vmem>>, vector<32x384xbf16>
    tpu.vector_store %arg6[%c32_39, %c384_40], %36 {strides = array<i32>} : memref<288x768xbf16, #tpu.memory_space<vmem>>, vector<32x384xbf16>,
    %c1_41 = arith.constant 1 : index
    %c0_42 = arith.constant 0 : index
    %c19_43 = arith.constant 19 : index
    %38 = vector.load %arg5[%c1_41, %c0_42, %c19_43] : memref<2x32x450xbf16, #tpu.memory_space<vmem>>, vector<1x32x384xbf16>
    %39 = vector.shape_cast %38 : vector<1x32x384xbf16> to vector<32x384xbf16>
    %c64_44 = arith.constant 64 : index
    %c384_45 = arith.constant 384 : index
    %40 = vector.load %arg6[%c64_44, %c384_45] : memref<288x768xbf16, #tpu.memory_space<vmem>>, vector<32x384xbf16>
    tpu.vector_store %arg6[%c64_44, %c384_45], %39 {strides = array<i32>} : memref<288x768xbf16, #tpu.memory_space<vmem>>, vector<32x384xbf16>,
    %c1_46 = arith.constant 1 : index
    %c0_47 = arith.constant 0 : index
    %c35_48 = arith.constant 35 : index
    %41 = vector.load %arg5[%c1_46, %c0_47, %c35_48] : memref<2x32x450xbf16, #tpu.memory_space<vmem>>, vector<1x32x384xbf16>
    %42 = vector.shape_cast %41 : vector<1x32x384xbf16> to vector<32x384xbf16>
    %c96_49 = arith.constant 96 : index
    %c384_50 = arith.constant 384 : index
    %43 = vector.load %arg6[%c96_49, %c384_50] : memref<288x768xbf16, #tpu.memory_space<vmem>>, vector<32x384xbf16>
    tpu.vector_store %arg6[%c96_49, %c384_50], %42 {strides = array<i32>} : memref<288x768xbf16, #tpu.memory_space<vmem>>, vector<32x384xbf16>,
    %c1_51 = arith.constant 1 : index
    %c0_52 = arith.constant 0 : index
    %c36_53 = arith.constant 36 : index
    %44 = vector.load %arg5[%c1_51, %c0_52, %c36_53] : memref<2x32x450xbf16, #tpu.memory_space<vmem>>, vector<1x32x384xbf16>
    %45 = vector.shape_cast %44 : vector<1x32x384xbf16> to vector<32x384xbf16>
    %c128_54 = arith.constant 128 : index
    %c384_55 = arith.constant 384 : index
    %46 = vector.load %arg6[%c128_54, %c384_55] : memref<288x768xbf16, #tpu.memory_space<vmem>>, vector<32x384xbf16>
    tpu.vector_store %arg6[%c128_54, %c384_55], %45 {strides = array<i32>} : memref<288x768xbf16, #tpu.memory_space<vmem>>, vector<32x384xbf16>,
    %c1_56 = arith.constant 1 : index
    %c0_57 = arith.constant 0 : index
    %c37_58 = arith.constant 37 : index
    %47 = vector.load %arg5[%c1_56, %c0_57, %c37_58] : memref<2x32x450xbf16, #tpu.memory_space<vmem>>, vector<1x32x384xbf16>
    %48 = vector.shape_cast %47 : vector<1x32x384xbf16> to vector<32x384xbf16>
    %c160_59 = arith.constant 160 : index
    %c384_60 = arith.constant 384 : index
    %49 = vector.load %arg6[%c160_59, %c384_60] : memref<288x768xbf16, #tpu.memory_space<vmem>>, vector<32x384xbf16>
    tpu.vector_store %arg6[%c160_59, %c384_60], %48 {strides = array<i32>} : memref<288x768xbf16, #tpu.memory_space<vmem>>, vector<32x384xbf16>,
    %c1_61 = arith.constant 1 : index
    %c0_62 = arith.constant 0 : index
    %c53_63 = arith.constant 53 : index
    %50 = vector.load %arg5[%c1_61, %c0_62, %c53_63] : memref<2x32x450xbf16, #tpu.memory_space<vmem>>, vector<1x32x384xbf16>
    %51 = vector.shape_cast %50 : vector<1x32x384xbf16> to vector<32x384xbf16>
    %c192_64 = arith.constant 192 : index
    %c384_65 = arith.constant 384 : index
    %52 = vector.load %arg6[%c192_64, %c384_65] : memref<288x768xbf16, #tpu.memory_space<vmem>>, vector<32x384xbf16>
    tpu.vector_store %arg6[%c192_64, %c384_65], %51 {strides = array<i32>} : memref<288x768xbf16, #tpu.memory_space<vmem>>, vector<32x384xbf16>,
    %c1_66 = arith.constant 1 : index
    %c0_67 = arith.constant 0 : index
    %c54_68 = arith.constant 54 : index
    %53 = vector.load %arg5[%c1_66, %c0_67, %c54_68] : memref<2x32x450xbf16, #tpu.memory_space<vmem>>, vector<1x32x384xbf16>
    %54 = vector.shape_cast %53 : vector<1x32x384xbf16> to vector<32x384xbf16>
    %c224_69 = arith.constant 224 : index
    %c384_70 = arith.constant 384 : index
    %55 = vector.load %arg6[%c224_69, %c384_70] : memref<288x768xbf16, #tpu.memory_space<vmem>>, vector<32x384xbf16>
    tpu.vector_store %arg6[%c224_69, %c384_70], %54 {strides = array<i32>} : memref<288x768xbf16, #tpu.memory_space<vmem>>, vector<32x384xbf16>,
    %c1_71 = arith.constant 1 : index
    %c0_72 = arith.constant 0 : index
    %c55_73 = arith.constant 55 : index
    %56 = vector.load %arg5[%c1_71, %c0_72, %c55_73] : memref<2x32x450xbf16, #tpu.memory_space<vmem>>, vector<1x32x384xbf16>
    %57 = vector.shape_cast %56 : vector<1x32x384xbf16> to vector<32x384xbf16>
    %c256_74 = arith.constant 256 : index
    %c384_75 = arith.constant 384 : index
    %58 = vector.load %arg6[%c256_74, %c384_75] : memref<288x768xbf16, #tpu.memory_space<vmem>>, vector<32x384xbf16>
    tpu.vector_store %arg6[%c256_74, %c384_75], %57 {strides = array<i32>} : memref<288x768xbf16, #tpu.memory_space<vmem>>, vector<32x384xbf16>,
    %c0_76 = arith.constant 0 : index
    %c0_77 = arith.constant 0 : index
    %59 = vector.load %arg2[%c0_76, %c0_77] : memref<16x288xbf16, #tpu.memory_space<vmem>>, vector<16x288xbf16>
    %c0_78 = arith.constant 0 : index
    %c0_79 = arith.constant 0 : index
    %60 = vector.load %arg6[%c0_78, %c0_79] : memref<288x768xbf16, #tpu.memory_space<vmem>>, vector<288x768xbf16>
    %cst_80 = arith.constant dense<0.000000e+00> : vector<16x768xf32>
    %61 = tpu.matmul %59, %60, %cst_80 {dimension_numbers = #tpu.dot_dimension_numbers<[1], [0], [0], [1], [0, 0, 1, 1], [], []>} : vector<16x288xbf16>, vector<288x768xbf16>, vector<16x768xf32> -> vector<16x768xf32>
    %cst_81 = arith.constant 0.000000e+00 : f32
    %62 = vector.broadcast %cst_81 : f32 to vector<16x768xf32>
    %63 = arith.maximumf %61, %62 : vector<16x768xf32>
    %64 = arith.truncf %63 : vector<16x768xf32> to vector<16x768xbf16>
    %c0_82 = arith.constant 0 : index
    %c0_83 = arith.constant 0 : index
    %65 = vector.load %arg3[%c0_82, %c0_83] : memref<32x16xbf16, #tpu.memory_space<vmem>>, vector<32x16xbf16>
    %cst_84 = arith.constant dense<0.000000e+00> : vector<32x768xf32>
    %66 = tpu.matmul %65, %64, %cst_84 {dimension_numbers = #tpu.dot_dimension_numbers<[1], [0], [0], [1], [0, 0, 1, 1], [], []>} : vector<32x16xbf16>, vector<16x768xbf16>, vector<32x768xf32> -> vector<32x768xf32>
    %c0_85 = arith.constant 0 : index
    %c0_86 = arith.constant 0 : index
    %c36_87 = arith.constant 36 : index
    %67 = vector.load %arg1[%c0_85, %c0_86, %c36_87] : memref<2x32x450xf32, #tpu.memory_space<vmem>>, vector<1x32x384xf32>
    %68 = vector.shape_cast %67 : vector<1x32x384xf32> to vector<32x384xf32>
    %69 = vector.extract_strided_slice %66 {offsets = [0, 0], sizes = [32, 384], strides = [1, 1]} : vector<32x768xf32> to vector<32x384xf32>
    %70 = arith.addf %68, %69 : vector<32x384xf32>
    %c0_88 = arith.constant 0 : index
    %c0_89 = arith.constant 0 : index
    %c0_90 = arith.constant 0 : index
    %71 = vector.load %arg4[%c0_88, %c0_89, %c0_90] : memref<2x32x384xf32, #tpu.memory_space<vmem>>, vector<1x32x384xf32>
    %72 = vector.shape_cast %71 : vector<1x32x384xf32> to vector<32x384xf32>
    %73 = vector.shape_cast %70 : vector<32x384xf32> to vector<1x32x384xf32>
    tpu.vector_store %arg4[%c0_88, %c0_89, %c0_90], %73 {strides = array<i32>} : memref<2x32x384xf32, #tpu.memory_space<vmem>>, vector<1x32x384xf32>,
    %c1_91 = arith.constant 1 : index
    %c0_92 = arith.constant 0 : index
    %c36_93 = arith.constant 36 : index
    %74 = vector.load %arg1[%c1_91, %c0_92, %c36_93] : memref<2x32x450xf32, #tpu.memory_space<vmem>>, vector<1x32x384xf32>
    %75 = vector.shape_cast %74 : vector<1x32x384xf32> to vector<32x384xf32>
    %76 = vector.extract_strided_slice %66 {offsets = [0, 384], sizes = [32, 384], strides = [1, 1]} : vector<32x768xf32> to vector<32x384xf32>
    %77 = arith.addf %75, %76 : vector<32x384xf32>
    %c1_94 = arith.constant 1 : index
    %c0_95 = arith.constant 0 : index
    %c0_96 = arith.constant 0 : index
    %78 = vector.load %arg4[%c1_94, %c0_95, %c0_96] : memref<2x32x384xf32, #tpu.memory_space<vmem>>, vector<1x32x384xf32>
    %79 = vector.shape_cast %78 : vector<1x32x384xf32> to vector<32x384xf32>
    %80 = vector.shape_cast %77 : vector<32x384xf32> to vector<1x32x384xf32>
    tpu.vector_store %arg4[%c1_94, %c0_95, %c0_96], %80 {strides = array<i32>} : memref<2x32x384xf32, #tpu.memory_space<vmem>>, vector<1x32x384xf32>,
    return
  }
  func.func @transform_0(%arg0: i32) -> (i32, i32, i32) {
    %c0_i32 = arith.constant 0 : i32
    %c0_i32_0 = arith.constant 0 : i32
    %c0_i32_1 = arith.constant 0 : i32
    return %arg0, %c0_i32, %c0_i32_0 : i32, i32, i32
  }
  func.func @transform_1(%arg0: i32) -> (i32, i32) {
    %c0_i32 = arith.constant 0 : i32
    %c0_i32_0 = arith.constant 0 : i32
    %c0_i32_1 = arith.constant 0 : i32
    return %c0_i32, %c0_i32_0 : i32, i32
  }
  func.func @transform_2(%arg0: i32) -> (i32, i32) {
    %c0_i32 = arith.constant 0 : i32
    %c0_i32_0 = arith.constant 0 : i32
    %c0_i32_1 = arith.constant 0 : i32
    return %c0_i32, %c0_i32_0 : i32, i32
  }
  func.func @transform_3(%arg0: i32) -> (i32, i32, i32) {
    %c0_i32 = arith.constant 0 : i32
    %c0_i32_0 = arith.constant 0 : i32
    %c0_i32_1 = arith.constant 0 : i32
    return %arg0, %c0_i32, %c0_i32_0 : i32, i32, i32
  }
}

</mosaic_0001>

<bundles_post_ra>
// kernel: residual_forward.1
= control target key start
LH: loop header
LB: loop body
LE: loop exit
PB: predicated region body
PF: predicated region fallthrough
CT: control target
= control target key end

     0   :  { %s2320_s12 = smov 0   ;;  %s3113_s0 = inlined_call_operand.vmem [shape: f32[8,32,450], index: 0, kind: input, shape index: {}]   ;;  %s3114_s1 = inlined_call_operand.vmem [shape: bf16[16,288], index: 1, kind: input, shape index: {}]   ;;  %s3115_s2 = inlined_call_operand.vmem [shape: bf16[32,16], index: 2, kind: input, shape index: {}]   ;;  %s3116_s3 = inlined_call_operand.vmem [shape: f32[8,32,384], index: 3, kind: output, shape index: {}]  }
   0x1 LB: > { %s2188_s13 = sadd.s32 4294967295, %s2287_s12   ;;  %p2192_p0 = scmp.ge.s32.totalorder %s2287_s12, 1  ;;  %s2287_s12 = sphi %s2320_s12, %s13_s12  }
   0x2   : > { %p139_p1 = scmp.lt.s32.totalorder %s2287_s12, 5 }
   0x4   : > { %p140_p2 = pnand %p2192_p0, %p139_p1 }
   0x5   : > { %s2193_s14 = sshll.u32 (!%p140_p2), %s2188_s13, 1  ;;  %vm263_vm0 = vcmask (!%p140_p2), 539648   ;;  %s2289_s19 = smov (!%p140_p2), 111   ;;  %vm309_vm1 = vcmask (!%p140_p2), 908288   ;;  %vm360_vm2 = vcmask (!%p140_p2), 900096   ;;  %vm411_vm3 = vcmask (!%p140_p2), 891904  }
   0x6   : > { %143 = sbr.rel (%p140_p2) target bundleno = 1130 (0x46a), region = 32  ;;  %p166_p3 = scmp.lt.s32.totalorder (!%p140_p2), %s2193_s14, 7  ;;  %vm462_vm4 = vcmask (!%p140_p2), 760832   ;;  %vm513_vm5 = vcmask (!%p140_p2), 752640   ;;  %vm564_vm6 = vcmask (!%p140_p2), 744448   ;;  %vm717_vm7 = vcmask (!%p140_p2), 596992  }
   0x7   : > { %s2290_s20 = smov (!%p140_p2), 110   ;;  %s2291_s21 = smov (!%p140_p2), 109   ;;  %vm615_vm8 = vcmask (!%p140_p2), 613376   ;;  %vm1314_vm9 = vcmask (!%p140_p2), 261120   ;;  %vm666_vm10 = vcmask (!%p140_p2), 605184   ;;  %vm1608_vm11 = vcmask (!%p140_p2), 130048  }
   0x8   : > { %s2292_s22 = smov (!%p140_p2), 93   ;;  %s2293_s23 = smov (!%p140_p2), 92   ;;  %vm1826_vm12 = vcmask (!%p140_p2), 293888  }
   0x9   : > { %s2294_s24 = smov (!%p140_p2), 91   ;;  %s2295_s25 = smov (!%p140_p2), 73  }
   0xa   : > { %s2297_s26 = smov (!%p140_p2), 75   ;;  %s2298_s27 = smov (!%p140_p2), 74  }
   0xb   : > { %s2299_s11 = smov (!%p140_p2), 36  }
   0xd   : > { %s3118_s14 = smov (!%p166_p3, %s2193_s14), 7 }
   0xe   : > { %s2242_s15 = sshll.u32 %s3118_s14, 7  ;;  %s2255_s13 = smul.u32 96, %s3118_s14 }
   0xf   : > { %s2334_s18 = scalar_lea.vmem %s3113_s0, %s2242_s15 }
  0x10   : > { %v181_v0 = vld [vmem:[%s2334_s18 + $0x8] sm:$0xff]  ;;  %v180_v2 = vld [vmem:[%s2334_s18] sm:$0xff]  ;;  %v182_v7 = vld [vmem:[%s2334_s18 + $0x10] sm:$0xff]  ;;  %s3040_s14 = scalar_lea.vmem %s3116_s3, %s2255_s13 }
  0x11   : > { %v185_v1 = vld [vmem:[%s2334_s18 + $0x28] sm:$0xff]  ;;  %v213_v3 = vmax.f32 %v181_v0, 0.0  ;;  %v184_v5 = vld [vmem:[%s2334_s18 + $0x20] sm:$0xff]  ;;  %v212_v6 = vmax.f32 %v180_v2, 0.0  ;;  %v186_v8 = vld [vmem:[%s2334_s18 + $0x30] sm:$0xff]  ;;  %v214_v10 = vmax.f32 %v182_v7, 0.0 }
  0x12   : > { %v217_v4 = vmax.f32 %v185_v1, 0.0  ;;  %v216_v9 = vmax.f32 %v184_v5, 0.0  ;;  %v218_v11 = vmax.f32 %v186_v8, 0.0  ;;  %v189_v12 = vld [vmem:[%s2334_s18 + $0x48] sm:$0xff]  ;;  %v190_v14 = vld [vmem:[%s2334_s18 + $0x50] sm:$0xff]  ;;  %v188_v20 = vld [vmem:[%s2334_s18 + $0x40] sm:$0xff] }
  0x13   : > { %v193_v13 = vld [vmem:[%s2334_s18 + $0x68] sm:$0xff]  ;;  %v221_v16 = vmax.f32 %v189_v12, 0.0  ;;  %v194_v18 = vld [vmem:[%s2334_s18 + $0x70] sm:$0xff]  ;;  %v222_v19 = vmax.f32 %v190_v14, 0.0  ;;  %v192_v21 = vld [vmem:[%s2334_s18 + $0x60] sm:$0xff]  ;;  %v220_v25 = vmax.f32 %v188_v20, 0.0 }
  0x14   : > { %v2345_v15 = vpack.c.bf16 %v217_v4, %v213_v3  ;;  %v225_v17 = vmax.f32 %v193_v13, 0.0  ;;  %v2350_v22 = vpack.c.bf16 %v216_v9, %v212_v6  ;;  %v2352_v23 = vpack.c.bf16 %v218_v11, %v214_v10  ;;  %v196_v26 = vld [vmem:[%s2334_s18 + $0x80] sm:$0xff]  ;;  %v197_v28 = vld [vmem:[%s2334_s18 + $0x88] sm:$0xff]  ;;  %v183_v34 = vld [vmem:[%s2334_s18 + $0x18] sm:$0xff] }
  0x15   : > { %v226_v24 = vmax.f32 %v194_v18, 0.0  ;;  %v200_v27 = vld [vmem:[%s2334_s18 + $0xa0] sm:$0xff]  ;;  %v224_v30 = vmax.f32 %v192_v21, 0.0  ;;  %v228_v31 = vmax.f32 %v196_v26, 0.0  ;;  %v201_v33 = vld [vmem:[%s2334_s18 + $0xa8] sm:$0xff]  ;;  %v187_v35 = vld [vmem:[%s2334_s18 + $0x38] sm:$0xff] }
  0x16   : > { %295 = vrot.lane.b32.xlu0 %v2345_v15, %s2289_s19  ;;  %v2359_v29 = vpack.c.bf16 %v225_v17, %v221_v16  ;;  %v232_v32 = vmax.f32 %v200_v27, 0.0  ;;  %293 = vrot.lane.b32.xlu1 %v2350_v22, %s2289_s19  ;;  %v229_v37 = vmax.f32 %v197_v28, 0.0  ;;  %v233_v38 = vmax.f32 %v201_v33, 0.0  ;;  %v204_v40 = vld [vmem:[%s2334_s18 + $0xc0] sm:$0xff]  ;;  %v205_v42 = vld [vmem:[%s2334_s18 + $0xc8] sm:$0xff] }
  0x17   : > { %v2366_v36 = vpack.c.bf16 %v226_v24, %v222_v19  ;;  %v215_v39 = vmax.f32 %v183_v34, 0.0  ;;  %v208_v41 = vld [vmem:[%s2334_s18 + $0xe0] sm:$0xff]  ;;  %v2371_v43 = vpack.c.bf16 %v224_v30, %v220_v25  ;;  %v219_v45 = vmax.f32 %v187_v35, 0.0  ;;  %v209_v47 = vld [vmem:[%s2334_s18 + $0xe8] sm:$0xff]  ;;  %v191_v48 = vld [vmem:[%s2334_s18 + $0x58] sm:$0xff] }
  0x18   : > { %v2373_v44 = vpack.c.bf16 %v232_v32, %v228_v31  ;;  %v236_v46 = vmax.f32 %v204_v40, 0.0  ;;  %v195_v49 = vld [vmem:[%s2334_s18 + $0x78] sm:$0xff]  ;;  %v2378_v50 = vpack.c.bf16 %v233_v38, %v229_v37  ;;  %v240_v51 = vmax.f32 %v208_v41, 0.0  ;;  %v198_v54 = vld [vmem:[%s2334_s18 + $0x90] sm:$0xff] }
  0x19   : > { %v237_v52 = vmax.f32 %v205_v42, 0.0  ;;  %v241_v53 = vmax.f32 %v209_v47, 0.0  ;;  %v202_v55 = vld [vmem:[%s2334_s18 + $0xb0] sm:$0xff]  ;;  %v199_v56 = vld [vmem:[%s2334_s18 + $0x98] sm:$0xff]  ;;  %v247_v57 = vpack.c.bf16 %v219_v45, %v215_v39  ;;  %v223_v58 = vmax.f32 %v191_v48, 0.0 }
  0x1a   : > { %297 = vrot.lane.b32.xlu0 %v2352_v23, %s2289_s19  ;;  %v227_v59 = vmax.f32 %v195_v49, 0.0  ;;  %v203_v60 = vld [vmem:[%s2334_s18 + $0xb8] sm:$0xff]  ;;  %303 = vrot.lane.b32.xlu1 %v2359_v29, %s2289_s19  ;;  %v2390_v63 = vpack.c.bf16 %v240_v51, %v236_v46  ;;  %v230_v1 = vmax.f32 %v198_v54, 0.0  ;;  %v234_v2 = vmax.f32 %v202_v55, 0.0  ;;  %v206_v10 = vld [vmem:[%s2334_s18 + $0xd0] sm:$0xff] }
  0x1b   : > { %v207_v61 = vld [vmem:[%s2334_s18 + $0xd8] sm:$0xff]  ;;  %v2392_v0 = vpack.c.bf16 %v241_v53, %v237_v52  ;;  %264 = vst.msk [vmem:[#allocation2 + $0x18] sm:$0xff] %vm263_vm0, %v247_v57  ;;  %v231_v4 = vmax.f32 %v199_v56, 0.0  ;;  %v235_v5 = vmax.f32 %v203_v60, 0.0  ;;  %v210_v11 = vld [vmem:[%s2334_s18 + $0xf0] sm:$0xff]  ;;  %v238_v12 = vmax.f32 %v206_v10, 0.0 }
  0x1c   : > { %v211_v62 = vld [vmem:[%s2334_s18 + $0xf8] sm:$0xff]  ;;  %v251_v3 = vpack.c.bf16 %v227_v59, %v223_v58  ;;  %v239_v6 = vmax.f32 %v207_v61, 0.0  ;;  %v2395_v7 = vpack.c.bf16 %v234_v2, %v230_v1  ;;  %v242_v13 = vmax.f32 %v210_v11, 0.0  ;;  %v2528_v25 = vld [vmem:[%s3114_s1 + $0x4] ss:$12 sps:$4 sm:$0xff]  }
  0x1d   : > { %v243_v8 = vmax.f32 %v211_v62, 0.0  ;;  %v255_v9 = vpack.c.bf16 %v235_v5, %v231_v4  ;;  %v2296_v17 = vmov 0   ;;  %1350 = vmatprep.mubr.bf16.mxu0 %v2528_v25 }
  0x1e   : > { %305 = vrot.lane.b32.xlu0 %v2366_v36, %s2289_s19  ;;  %268 = vst.msk [vmem:[#allocation2 + $0x38] sm:$0xff] %vm263_vm0, %v251_v3  ;;  %301 = vrot.lane.b32.xlu1 %v2371_v43, %s2289_s19  ;;  %v2405_v16 = vpack.c.bf16 %v242_v13, %v238_v12 }
  0x1f   : > { %v259_v14 = vpack.c.bf16 %v243_v8, %v239_v6  ;;  %272 = vst.msk [vmem:[#allocation2 + $0x58] sm:$0xff] %vm263_vm0, %v255_v9  ;;  %1393 = vmatprep.mubr.bf16.mxu1 %v2296_v17 }
  0x21   : > { %276 = vst.msk [vmem:[#allocation2 + $0x78] sm:$0xff] %vm263_vm0, %v259_v14 }
  0x22   : > { %346 = vrot.lane.b32.xlu0 %v2345_v15, %s2290_s20  ;;  %348 = vrot.lane.b32.xlu1 %v2352_v23, %s2290_s20  ;;  %v2489_v18 = vld [vmem:[#allocation2 + $0x18] sm:$0xff] }
  0x25   : > { %v2503_v19 = vld [vmem:[#allocation2 + $0x38] sm:$0xff] }
  0x26   : > { %344 = vrot.lane.b32.xlu0 %v2350_v22, %s2290_s20  ;;  %354 = vrot.lane.b32.xlu1 %v2359_v29, %s2290_s20  ;;  %v2553_v34 = vld [vmem:[#allocation2 + $0x58] sm:$0xff] }
  0x28   : > { %v2577_v45 = vld [vmem:[#allocation2 + $0x78] sm:$0xff] }
  0x2a   : > { %356 = vrot.lane.b32.xlu0 %v2366_v36, %s2290_s20  ;;  %352 = vrot.lane.b32.xlu1 %v2371_v43, %s2290_s20 }
  0x2e   : > { %397 = vrot.lane.b32.xlu0 %v2345_v15, %s2291_s21  ;;  %399 = vrot.lane.b32.xlu1 %v2352_v23, %s2291_s21 }
  0x32   : > { %395 = vrot.lane.b32.xlu0 %v2350_v22, %s2291_s21  ;;  %405 = vrot.lane.b32.xlu1 %v2359_v29, %s2291_s21 }
  0x36   : > { %407 = vrot.lane.b32.xlu0 %v2366_v36, %s2291_s21  ;;  %403 = vrot.lane.b32.xlu1 %v2371_v43, %s2291_s21 }
  0x3a   : > { %448 = vrot.lane.b32.xlu0 %v2345_v15, %s2292_s22  ;;  %450 = vrot.lane.b32.xlu1 %v2352_v23, %s2292_s22 }
  0x3e   : > { %446 = vrot.lane.b32.xlu0 %v2350_v22, %s2292_s22  ;;  %456 = vrot.lane.b32.xlu1 %v2359_v29, %s2292_s22 }
  0x42   : > { %458 = vrot.lane.b32.xlu0 %v2366_v36, %s2292_s22  ;;  %454 = vrot.lane.b32.xlu1 %v2371_v43, %s2292_s22 }
  0x46   : > { %499 = vrot.lane.b32.xlu0 %v2345_v15, %s2293_s23  ;;  %501 = vrot.lane.b32.xlu1 %v2352_v23, %s2293_s23 }
  0x4a   : > { %497 = vrot.lane.b32.xlu0 %v2350_v22, %s2293_s23  ;;  %507 = vrot.lane.b32.xlu1 %v2359_v29, %s2293_s23 }
  0x4e   : > { %509 = vrot.lane.b32.xlu0 %v2366_v36, %s2293_s23  ;;  %505 = vrot.lane.b32.xlu1 %v2371_v43, %s2293_s23 }
  0x52   : > { %550 = vrot.lane.b32.xlu0 %v2345_v15, %s2294_s24  ;;  %552 = vrot.lane.b32.xlu1 %v2352_v23, %s2294_s24 }
  0x56   : > { %703 = vrot.lane.b32.xlu0 %v2345_v15, %s2295_s25  ;;  %705 = vrot.lane.b32.xlu1 %v2352_v23, %s2295_s25 }
  0x5a   : > { %548 = vrot.lane.b32.xlu0 %v2350_v22, %s2294_s24  ;;  %701 = vrot.lane.b32.xlu1 %v2350_v22, %s2295_s25 }
  0x5e   : > { %558 = vrot.lane.b32.xlu0 %v2359_v29, %s2294_s24  ;;  %560 = vrot.lane.b32.xlu1 %v2366_v36, %s2294_s24 }
  0x62   : > { %711 = vrot.lane.b32.xlu0 %v2359_v29, %s2295_s25  ;;  %713 = vrot.lane.b32.xlu1 %v2366_v36, %s2295_s25 }
  0x66   : > { %556 = vrot.lane.b32.xlu0 %v2371_v43, %s2294_s24  ;;  %709 = vrot.lane.b32.xlu1 %v2371_v43, %s2295_s25 }
  0x6a   : > { %601 = vrot.lane.b32.xlu0 %v2345_v15, %s2297_s26  ;;  %603 = vrot.lane.b32.xlu1 %v2352_v23, %s2297_s26 }
  0x6e   : > { %753 = vrot.lane.b32.xlu0 %v2373_v44, %s2289_s19  ;;  %755 = vrot.lane.b32.xlu1 %v2378_v50, %s2289_s19 }
  0x72   : > { %299 = vrot.lane.b32.xlu0 %v2489_v18, %s2289_s19  ;;  %599 = vrot.lane.b32.xlu1 %v2350_v22, %s2297_s26 }
  0x76   : > { %609 = vrot.lane.b32.xlu0 %v2359_v29, %s2297_s26  ;;  %611 = vrot.lane.b32.xlu1 %v2366_v36, %s2297_s26 }
  0x7a   : > { %761 = vrot.lane.b32.xlu0 %v2390_v63, %s2289_s19  ;;  %763 = vrot.lane.b32.xlu1 %v2392_v0, %s2289_s19 }
  0x7e   : > { %307 = vrot.lane.b32.xlu0 %v2503_v19, %s2289_s19  ;;  %607 = vrot.lane.b32.xlu1 %v2371_v43, %s2297_s26 }
  0x82   : > { %652 = vrot.lane.b32.xlu0 %v2345_v15, %s2298_s27  ;;  %654 = vrot.lane.b32.xlu1 %v2352_v23, %s2298_s27 }
  0x86   : > { %803 = vrot.lane.b32.xlu0 %v2373_v44, %s2290_s20  ;;  %805 = vrot.lane.b32.xlu1 %v2378_v50, %s2290_s20 }
  0x88   : > { %v296_v20 = vpop.permute.xlu0 %295  ;;  %v294_v21 = vpop.permute.xlu1 %293 }
  0x89   : > { %v310_v26 = vsel %vm309_vm1, %v294_v21, %v296_v20 }
  0x8a   : > { %350 = vrot.lane.b32.xlu0 %v2489_v18, %s2290_s20  ;;  %650 = vrot.lane.b32.xlu1 %v2350_v22, %s2298_s27 }
  0x8c   : > { %v2521_v24 = vpop.permute.xlu0 %297  ;;  %v304_v15 = vpop.permute.xlu1 %303 }
  0x8d   : > { %v311_v23 = vsel %vm309_vm1, %v296_v20, %v2521_v24 }
  0x8e   : > { %1318 = vmatprep.subr.bf16.mxu0 %v311_v23  ;;  %660 = vrot.lane.b32.xlu0 %v2359_v29, %s2298_s27 }
  0x8f   : > { %662 = vrot.lane.b32.xlu1 %v2366_v36, %s2298_s27  ;;  %1319 = vmatpush1.bf16.msra.mxu0 %v310_v26 }
  0x90   : > { %v2535_v22 = vpop.permute.xlu0 %305  ;;  %v302_v27 = vpop.permute.xlu1 %301 }
  0x91   : > { %v314_v28 = vsel %vm309_vm1, %v304_v15, %v2535_v22  ;;  %v313_v29 = vsel %vm309_vm1, %v302_v27, %v304_v15 }
  0x92   : > { %811 = vrot.lane.b32.xlu0 %v2390_v63, %s2290_s20  ;;  %1320 = vmatprep.subr.bf16.mxu0 %v314_v28 }
  0x93   : > { %813 = vrot.lane.b32.xlu1 %v2392_v0, %s2290_s20  ;;  %1321 = vmatpush1.bf16.msra.mxu0 %v313_v29 }
  0x94   : > { %v347_v30 = vpop.permute.xlu0 %346  ;;  %v2545_v31 = vpop.permute.xlu1 %348 }
  0x95   : > { %v362_v32 = vsel %vm360_vm2, %v347_v30, %v2545_v31 }
  0x96   : > { %358 = vrot.lane.b32.xlu0 %v2503_v19, %s2290_s20  ;;  %1322 = vmatprep.subr.bf16.mxu0 %v362_v32 }
  0x97   : > { %658 = vrot.lane.b32.xlu1 %v2371_v43, %s2298_s27 }
  0x98   : > { %v345_v33 = vpop.permute.xlu0 %344  ;;  %v355_v35 = vpop.permute.xlu1 %354 }
  0x99   : > { %v361_v36 = vsel %vm360_vm2, %v345_v33, %v347_v30 }
  0x9a   : > { %757 = vrot.lane.b32.xlu0 %v2395_v7, %s2289_s19  ;;  %1323 = vmatpush1.bf16.msra.mxu0 %v361_v36 }
  0x9b   : > { %759 = vrot.lane.b32.xlu1 %v2553_v34, %s2289_s19 }
  0x9c   : > { %v2560_v37 = vpop.permute.xlu0 %356  ;;  %v353_v38 = vpop.permute.xlu1 %352 }
  0x9d   : > { %v365_v39 = vsel %vm360_vm2, %v355_v35, %v2560_v37  ;;  %v364_v40 = vsel %vm360_vm2, %v353_v38, %v355_v35 }
  0x9e   : > { %853 = vrot.lane.b32.xlu0 %v2373_v44, %s2291_s21  ;;  %1324 = vmatprep.subr.bf16.mxu0 %v365_v39 }
  0x9f   : > { %855 = vrot.lane.b32.xlu1 %v2378_v50, %s2291_s21  ;;  %1325 = vmatpush1.bf16.msra.mxu0 %v364_v40 }
  0xa0   : > { %v398_v41 = vpop.permute.xlu0 %397  ;;  %v2569_v42 = vpop.permute.xlu1 %399 }
  0xa1   : > { %v413_v43 = vsel %vm411_vm3, %v398_v41, %v2569_v42 }
  0xa2   : > { %401 = vrot.lane.b32.xlu0 %v2489_v18, %s2291_s21  ;;  %1326 = vmatprep.subr.bf16.mxu0 %v413_v43 }
  0xa3   : > { %765 = vrot.lane.b32.xlu1 %v2405_v16, %s2289_s19 }
  0xa4   : > { %v396_v46 = vpop.permute.xlu0 %395  ;;  %v406_v47 = vpop.permute.xlu1 %405 }
  0xa5   : > { %v412_v48 = vsel %vm411_vm3, %v396_v46, %v398_v41  ;;  %v2682_v46 = vld [vmem:[%s3114_s1 + $0x8] ss:$12 sps:$4 sm:$0xff]  }
  0xa6   : > { %767 = vrot.lane.b32.xlu0 %v2577_v45, %s2289_s19  ;;  %1327 = vmatpush1.bf16.msra.mxu0 %v412_v48 }
  0xa7   : > { %861 = vrot.lane.b32.xlu1 %v2390_v63, %s2291_s21 }
  0xa8   : > { %v2584_v49 = vpop.permute.xlu0 %407  ;;  %v404_v51 = vpop.permute.xlu1 %403 }
  0xa9   : > { %v416_v52 = vsel %vm411_vm3, %v406_v47, %v2584_v49  ;;  %v415_v53 = vsel %vm411_vm3, %v404_v51, %v406_v47 }
  0xaa   : > { %863 = vrot.lane.b32.xlu0 %v2392_v0, %s2291_s21  ;;  %1328 = vmatprep.subr.bf16.mxu0 %v416_v52 }
  0xab   : > { %409 = vrot.lane.b32.xlu1 %v2503_v19, %s2291_s21  ;;  %1329 = vmatpush1.bf16.msra.mxu0 %v415_v53 }
  0xac   : > { %v449_v54 = vpop.permute.xlu0 %448  ;;  %v2593_v55 = vpop.permute.xlu1 %450 }
  0xad   : > { %v464_v56 = vsel %vm462_vm4, %v449_v54, %v2593_v55 }
  0xae   : > { %807 = vrot.lane.b32.xlu0 %v2395_v7, %s2290_s20  ;;  %1330 = vmatprep.subr.bf16.mxu0 %v464_v56 }
  0xaf   : > { %809 = vrot.lane.b32.xlu1 %v2553_v34, %s2290_s20 }
  0xb0   : > { %v447_v57 = vpop.permute.xlu0 %446  ;;  %v457_v58 = vpop.permute.xlu1 %456 }
  0xb1   : > { %v463_v59 = vsel %vm462_vm4, %v447_v57, %v449_v54 }
  0xb2   : > { %903 = vrot.lane.b32.xlu0 %v2373_v44, %s2292_s22  ;;  %1331 = vmatpush1.bf16.msra.mxu0 %v463_v59 }
  0xb3   : > { %905 = vrot.lane.b32.xlu1 %v2378_v50, %s2292_s22 }
  0xb4   : > { %v2606_v60 = vpop.permute.xlu0 %458  ;;  %v455_v61 = vpop.permute.xlu1 %454 }
  0xb5   : > { %v467_v62 = vsel %vm462_vm4, %v457_v58, %v2606_v60  ;;  %v466_v1 = vsel %vm462_vm4, %v455_v61, %v457_v58 }
  0xb6   : > { %452 = vrot.lane.b32.xlu0 %v2489_v18, %s2292_s22  ;;  %1332 = vmatprep.subr.bf16.mxu0 %v467_v62 }
  0xb7   : > { %815 = vrot.lane.b32.xlu1 %v2405_v16, %s2290_s20  ;;  %1333 = vmatpush1.bf16.msra.mxu0 %v466_v1 }
  0xb8   : > { %v500_v2 = vpop.permute.xlu0 %499  ;;  %v2615_v3 = vpop.permute.xlu1 %501 }
  0xb9   : > { %v515_v4 = vsel %vm513_vm5, %v500_v2, %v2615_v3 }
  0xba   : > { %817 = vrot.lane.b32.xlu0 %v2577_v45, %s2290_s20  ;;  %1334 = vmatprep.subr.bf16.mxu0 %v515_v4 }
  0xbb   : > { %911 = vrot.lane.b32.xlu1 %v2390_v63, %s2292_s22 }
  0xbc   : > { %v498_v5 = vpop.permute.xlu0 %497  ;;  %v508_v6 = vpop.permute.xlu1 %507 }
  0xbd   : > { %v514_v8 = vsel %vm513_vm5, %v498_v5, %v500_v2 }
  0xbe   : > { %913 = vrot.lane.b32.xlu0 %v2392_v0, %s2292_s22  ;;  %1335 = vmatpush1.bf16.msra.mxu0 %v514_v8 }
  0xbf   : > { %460 = vrot.lane.b32.xlu1 %v2503_v19, %s2292_s22 }
  0xc0   : > { %v2628_v9 = vpop.permute.xlu0 %509  ;;  %v506_v10 = vpop.permute.xlu1 %505 }
  0xc1   : > { %v518_v11 = vsel %vm513_vm5, %v508_v6, %v2628_v9  ;;  %v517_v12 = vsel %vm513_vm5, %v506_v10, %v508_v6 }
  0xc2   : > { %857 = vrot.lane.b32.xlu0 %v2395_v7, %s2291_s21  ;;  %1336 = vmatprep.subr.bf16.mxu0 %v518_v11 }
  0xc3   : > { %859 = vrot.lane.b32.xlu1 %v2553_v34, %s2291_s21  ;;  %1337 = vmatpush1.bf16.msra.mxu0 %v517_v12 }
  0xc4   : > { %v551_v13 = vpop.permute.xlu0 %550  ;;  %v2637_v14 = vpop.permute.xlu1 %552 }
  0xc5   : > { %v566_v20 = vsel %vm564_vm6, %v551_v13, %v2637_v14 }
  0xc6   : > { %953 = vrot.lane.b32.xlu0 %v2373_v44, %s2293_s23  ;;  %1338 = vmatprep.subr.bf16.mxu0 %v566_v20 }
  0xc7   : > { %955 = vrot.lane.b32.xlu1 %v2378_v50, %s2293_s23 }
  0xc8   : > { %v704_v21 = vpop.permute.xlu0 %703  ;;  %v2645_v15 = vpop.permute.xlu1 %705 }
  0xc9   : > { %v719_v23 = vsel %vm717_vm7, %v704_v21, %v2645_v15 }
  0xca   : > { %503 = vrot.lane.b32.xlu0 %v2489_v18, %s2293_s23  ;;  %1361 = vmatprep.subr.bf16.mxu1 %v719_v23 }
  0xcb   : > { %865 = vrot.lane.b32.xlu1 %v2405_v16, %s2291_s21 }
  0xcc   : > { %v549_v26 = vpop.permute.xlu0 %548  ;;  %v702_v27 = vpop.permute.xlu1 %701 }
  0xcd   : > { %v565_v28 = vsel %vm564_vm6, %v549_v26, %v551_v13  ;;  %v718_v29 = vsel %vm717_vm7, %v702_v27, %v704_v21 }
  0xce   : > { %867 = vrot.lane.b32.xlu0 %v2577_v45, %s2291_s21  ;;  %1339 = vmatpush1.bf16.msra.mxu0 %v565_v28 }
  0xcf   : > { %961 = vrot.lane.b32.xlu1 %v2390_v63, %s2293_s23  ;;  %1362 = vmatpush1.bf16.msra.mxu1 %v718_v29 }
  0xd0   : > { %v559_v30 = vpop.permute.xlu0 %558  ;;  %v2659_v32 = vpop.permute.xlu1 %560 }
  0xd1   : > { %v569_v33 = vsel %vm564_vm6, %v559_v30, %v2659_v32 }
  0xd2   : > { %963 = vrot.lane.b32.xlu0 %v2392_v0, %s2293_s23  ;;  %1340 = vmatprep.subr.bf16.mxu0 %v569_v33 }
  0xd3   : > { %511 = vrot.lane.b32.xlu1 %v2503_v19, %s2293_s23 }
  0xd4   : > { %v712_v35 = vpop.permute.xlu0 %711  ;;  %v2667_v36 = vpop.permute.xlu1 %713 }
  0xd5   : > { %v722_v38 = vsel %vm717_vm7, %v712_v35, %v2667_v36 }
  0xd6   : > { %907 = vrot.lane.b32.xlu0 %v2395_v7, %s2292_s22  ;;  %1363 = vmatprep.subr.bf16.mxu1 %v722_v38 }
  0xd7   : > { %909 = vrot.lane.b32.xlu1 %v2553_v34, %s2292_s22 }
  0xd8   : > { %v557_v39 = vpop.permute.xlu0 %556  ;;  %v710_v40 = vpop.permute.xlu1 %709 }
  0xd9   : > { %v568_v41 = vsel %vm564_vm6, %v557_v39, %v559_v30  ;;  %v721_v43 = vsel %vm717_vm7, %v710_v40, %v712_v35 }
  0xda   : > { %1003 = vrot.lane.b32.xlu0 %v2373_v44, %s2294_s24  ;;  %1341 = vmatpush1.bf16.msra.mxu0 %v568_v41 }
  0xdb   : > { %1005 = vrot.lane.b32.xlu1 %v2378_v50, %s2294_s24  ;;  %1364 = vmatpush1.bf16.msra.mxu1 %v721_v43 }
  0xdc   : > { %v602_v47 = vpop.permute.xlu0 %601  ;;  %v2686_v48 = vpop.permute.xlu1 %603 }
  0xdd   : > { %v617_v51 = vsel %vm615_vm8, %v602_v47, %v2686_v48 }
  0xde   : > { %554 = vrot.lane.b32.xlu0 %v2489_v18, %s2294_s24  ;;  %2201 = vmatmul.mubr.msk.bf16.vlgmr.msra.gmra.mrb[0].mxu1 %vm1314_vm9, %v2682_v46 }
  0xdf   : > { %915 = vrot.lane.b32.xlu1 %v2405_v16, %s2292_s22  ;;  %1342 = vmatprep.subr.bf16.mxu0 %v617_v51 }
  0xe0   : > { %v754_v52 = vpop.permute.xlu0 %753  ;;  %1436 = vmatprep.mubr.bf16.mxu1 %v2528_v25  ;;  %v2697_v53 = vpop.permute.xlu1 %755 }
  0xe1   : > { %v769_v54 = vsel %vm309_vm1, %v754_v52, %v2697_v53 }
  0xe2   : > { %917 = vrot.lane.b32.xlu0 %v2577_v45, %s2292_s22  ;;  %1404 = vmatprep.subr.bf16.mxu1 %v769_v54 }
  0xe3   : > { %1011 = vrot.lane.b32.xlu1 %v2390_v63, %s2294_s24 }
  0xe4   : > { %v300_v56 = vpop.permute.xlu0 %299  ;;  %v600_v58 = vpop.permute.xlu1 %599 }
  0xe5   : > { %v312_v57 = vsel %vm309_vm1, %v2521_v24, %v300_v56  ;;  %v616_v59 = vsel %vm615_vm8, %v600_v58, %v602_v47  ;;  %v2782_v47 = vld [vmem:[%s3114_s1] ss:$12 sps:$4 sm:$0xff]  }
  0xe6   : > { %1013 = vrot.lane.b32.xlu0 %v2392_v0, %s2294_s24  ;;  %1405 = vmatpush1.bf16.msra.mxu1 %v312_v57 }
  0xe7   : > { %562 = vrot.lane.b32.xlu1 %v2503_v19, %s2294_s24  ;;  %1343 = vmatpush1.bf16.msra.mxu0 %v616_v59 }
  0xe8   : > { %v610_v61 = vpop.permute.xlu0 %609  ;;  %v2712_v62 = vpop.permute.xlu1 %611 }
  0xe9   : > { %v620_v24 = vsel %vm615_vm8, %v610_v61, %v2712_v62 }
  0xea   : > { %957 = vrot.lane.b32.xlu0 %v2395_v7, %s2293_s23  ;;  %1344 = vmatprep.subr.bf16.mxu0 %v620_v24 }
  0xeb   : > { %959 = vrot.lane.b32.xlu1 %v2553_v34, %s2293_s23 }
  0xec   : > { %v762_v1 = vpop.permute.xlu0 %761  ;;  %v2720_v2 = vpop.permute.xlu1 %763 }
  0xed   : > { %v772_v4 = vsel %vm309_vm1, %v762_v1, %v2720_v2 }
  0xee   : > { %1053 = vrot.lane.b32.xlu0 %v2373_v44, %s2297_s26  ;;  %1406 = vmatprep.subr.bf16.mxu1 %v772_v4 }
  0xef   : > { %1055 = vrot.lane.b32.xlu1 %v2378_v50, %s2297_s26 }
  0xf0   : > { %v308_v5 = vpop.permute.xlu0 %307  ;;  %v608_v8 = vpop.permute.xlu1 %607 }
  0xf1   : > { %v315_v6 = vsel %vm309_vm1, %v2535_v22, %v308_v5  ;;  %v619_v10 = vsel %vm615_vm8, %v608_v8, %v610_v61 }
  0xf2   : > { %605 = vrot.lane.b32.xlu0 %v2489_v18, %s2297_s26  ;;  %1407 = vmatpush1.bf16.msra.mxu1 %v315_v6 }
  0xf3   : > { %965 = vrot.lane.b32.xlu1 %v2405_v16, %s2293_s23  ;;  %1345 = vmatpush1.bf16.msra.mxu0 %v619_v10 }
  0xf4   : > { %v653_v11 = vpop.permute.xlu0 %652  ;;  %v2735_v12 = vpop.permute.xlu1 %654 }
  0xf5   : > { %v668_v22 = vsel %vm666_vm10, %v653_v11, %v2735_v12 }
  0xf6   : > { %967 = vrot.lane.b32.xlu0 %v2577_v45, %s2293_s23  ;;  %1346 = vmatprep.subr.bf16.mxu0 %v668_v22 }
  0xf7   : > { %1061 = vrot.lane.b32.xlu1 %v2390_v63, %s2297_s26 }
  0xf8   : > { %v804_v13 = vpop.permute.xlu0 %803  ;;  %v2743_v20 = vpop.permute.xlu1 %805 }
  0xf9   : > { %v819_v21 = vsel %vm360_vm2, %v804_v13, %v2743_v20 }
  0xfa   : > { %1063 = vrot.lane.b32.xlu0 %v2392_v0, %s2297_s26  ;;  %1408 = vmatprep.subr.bf16.mxu1 %v819_v21 }
  0xfb   : > { %613 = vrot.lane.b32.xlu1 %v2503_v19, %s2297_s26 }
  0xfc   : > { %v351_v23 = vpop.permute.xlu0 %350  ;;  %v651_v27 = vpop.permute.xlu1 %650 }
  0xfd   : > { %v363_v26 = vsel %vm360_vm2, %v2545_v31, %v351_v23  ;;  %v667_v28 = vsel %vm666_vm10, %v651_v27, %v653_v11 }
  0xfe   : > { %1007 = vrot.lane.b32.xlu0 %v2395_v7, %s2294_s24  ;;  %1409 = vmatpush1.bf16.msra.mxu1 %v363_v26 }
  0xff   : > { %1009 = vrot.lane.b32.xlu1 %v2553_v34, %s2294_s24  ;;  %1347 = vmatpush1.bf16.msra.mxu0 %v667_v28 }
 0x100   : > { %v661_v29 = vpop.permute.xlu0 %660 }
 0x101   : > { %v2758_v30 = vpop.permute.xlu1 %662 }
 0x102   : > { %1103 = vrot.lane.b32.xlu0 %v2373_v44, %s2298_s27  ;;  %v671_v31 = vsel %vm666_vm10, %v661_v29, %v2758_v30 }
 0x103   : > { %1105 = vrot.lane.b32.xlu1 %v2378_v50, %s2298_s27  ;;  %1348 = vmatprep.subr.bf16.mxu0 %v671_v31 }
 0x104   : > { %v812_v33 = vpop.permute.xlu0 %811 }
 0x105   : > { %v2766_v35 = vpop.permute.xlu1 %813 }
 0x106   : > { %656 = vrot.lane.b32.xlu0 %v2489_v18, %s2298_s27  ;;  %v822_v38 = vsel %vm360_vm2, %v812_v33, %v2766_v35 }
 0x107   : > { %1015 = vrot.lane.b32.xlu1 %v2405_v16, %s2294_s24  ;;  %1410 = vmatprep.subr.bf16.mxu1 %v822_v38 }
 0x108   : > { %v359_v39 = vpop.permute.xlu0 %358 }
 0x109   : > { %v366_v40 = vsel %vm360_vm2, %v2560_v37, %v359_v39  ;;  %v659_v41 = vpop.permute.xlu1 %658 }
 0x10a   : > { %1017 = vrot.lane.b32.xlu0 %v2577_v45, %s2294_s24  ;;  %v670_v43 = vsel %vm666_vm10, %v659_v41, %v661_v29  ;;  %1411 = vmatpush1.bf16.msra.mxu1 %v366_v40 }
 0x10b   : > { %1111 = vrot.lane.b32.xlu1 %v2390_v63, %s2298_s27  ;;  %1349 = vmatpush1.bf16.msra.mxu0 %v670_v43 }
 0x10c   : > { %v758_v51 = vpop.permute.xlu0 %757 }
 0x10d   : > { %v760_v52 = vpop.permute.xlu1 %759  ;;  %v770_v37 = vsel %vm309_vm1, %v2697_v53, %v758_v51 }
 0x10e   : > { %1113 = vrot.lane.b32.xlu0 %v2392_v0, %s2298_s27  ;;  %v771_v54 = vsel %vm309_vm1, %v758_v51, %v760_v52  ;;  %1351 = vmatmul.mubr.bf16.vlgmr.msra.gmra.mrb[0].mxu0 %v2782_v47 }
 0x10f   : > { %664 = vrot.lane.b32.xlu1 %v2503_v19, %s2298_s27  ;;  %1490 = vmatprep.subr.bf16.mxu0 %v771_v54 }
 0x110   : > { %1491 = vmatpush1.bf16.msra.mxu0 %v770_v37  ;;  %v854_v56 = vpop.permute.xlu0 %853  ;;  %1522 = vmatprep.mubr.bf16.mxu0 %v2528_v25 }
 0x111   : > { %v2795_v57 = vpop.permute.xlu1 %855 }
 0x112   : > { %1057 = vrot.lane.b32.xlu0 %v2395_v7, %s2297_s26  ;;  %v869_v53 = vsel %vm411_vm3, %v854_v56, %v2795_v57 }
 0x113   : > { %1059 = vrot.lane.b32.xlu1 %v2553_v34, %s2297_s26  ;;  %1412 = vmatprep.subr.bf16.mxu1 %v869_v53 }
 0x114   : > { %v402_v58 = vpop.permute.xlu0 %401 }
 0x115   : > { %v414_v59 = vsel %vm411_vm3, %v2569_v42, %v402_v58  ;;  %v766_v61 = vpop.permute.xlu1 %765 }
 0x116   : > { %1065 = vrot.lane.b32.xlu0 %v2405_v16, %s2297_s26  ;;  %1413 = vmatpush1.bf16.msra.mxu1 %v414_v59  ;;  %v773_v4 = vsel %vm309_vm1, %v2720_v2, %v766_v61 }
 0x117   : > { %1067 = vrot.lane.b32.xlu1 %v2577_v45, %s2297_s26 }
 0x118   : > { %v768_v25 = vpop.permute.xlu0 %767 }
 0x119   : > { %v862_v24 = vpop.permute.xlu1 %861  ;;  %v774_v1 = vsel %vm309_vm1, %v766_v61, %v768_v25 }
 0x11a   : > { %1153 = vrot.lane.b32.xlu0 %v2373_v44, %s2295_s25  ;;  %1492 = vmatprep.subr.bf16.mxu0 %v774_v1 }
 0x11b   : > { %1155 = vrot.lane.b32.xlu1 %v2378_v50, %s2295_s25  ;;  %1493 = vmatpush1.bf16.msra.mxu0 %v773_v4 }
 0x11c   : > { %v2816_v42 = vpop.permute.xlu0 %863 }
 0x11d   : > { %v410_v5 = vpop.permute.xlu1 %409  ;;  %v872_v6 = vsel %vm411_vm3, %v862_v24, %v2816_v42 }
 0x11e   : > { %v417_v8 = vsel %vm411_vm3, %v2584_v49, %v410_v5  ;;  %707 = vrot.lane.b32.xlu0 %v2489_v18, %s2295_s25  ;;  %1414 = vmatprep.subr.bf16.mxu1 %v872_v6 }
 0x11f   : > { %1107 = vrot.lane.b32.xlu1 %v2395_v7, %s2298_s27  ;;  %1415 = vmatpush1.bf16.msra.mxu1 %v417_v8 }
 0x120   : > { %v808_v44 = vpop.permute.xlu0 %807 }
 0x121   : > { %v810_v50 = vpop.permute.xlu1 %809  ;;  %v820_v2 = vsel %vm360_vm2, %v2743_v20, %v808_v44 }
 0x122   : > { %1109 = vrot.lane.b32.xlu0 %v2553_v34, %s2298_s27  ;;  %v821_v10 = vsel %vm360_vm2, %v808_v44, %v810_v50 }
 0x123   : > { %1161 = vrot.lane.b32.xlu1 %v2390_v63, %s2295_s25  ;;  %1494 = vmatprep.subr.bf16.mxu0 %v821_v10 }
 0x124   : > { %1495 = vmatpush1.bf16.msra.mxu0 %v820_v2  ;;  %v904_v18 = vpop.permute.xlu0 %903 }
 0x125   : > { %v906_v49 = vpop.permute.xlu1 %905 }
 0x126   : > { %1163 = vrot.lane.b32.xlu0 %v2392_v0, %s2295_s25  ;;  %v919_v11 = vsel %vm462_vm4, %v904_v18, %v906_v49 }
 0x127   : > { %715 = vrot.lane.b32.xlu1 %v2503_v19, %s2295_s25  ;;  %1416 = vmatprep.subr.bf16.mxu1 %v919_v11 }
 0x128   : > { %v453_v22 = vpop.permute.xlu0 %452 }
 0x129   : > { %v465_v13 = vsel %vm462_vm4, %v2593_v55, %v453_v22  ;;  %v816_v20 = vpop.permute.xlu1 %815 }
 0x12a   : > { %1115 = vrot.lane.b32.xlu0 %v2405_v16, %s2298_s27  ;;  %1417 = vmatpush1.bf16.msra.mxu1 %v465_v13  ;;  %v823_v19 = vsel %vm360_vm2, %v2766_v35, %v816_v20 }
 0x12b   : > { %1117 = vrot.lane.b32.xlu1 %v2577_v45, %s2298_s27 }
 0x12c   : > { %v818_v63 = vpop.permute.xlu0 %817 }
 0x12d   : > { %v912_v0 = vpop.permute.xlu1 %911  ;;  %v824_v21 = vsel %vm360_vm2, %v816_v20, %v818_v63 }
 0x12e   : > { %1157 = vrot.lane.b32.xlu0 %v2395_v7, %s2295_s25  ;;  %1496 = vmatprep.subr.bf16.mxu0 %v824_v21 }
 0x12f   : > { %1159 = vrot.lane.b32.xlu1 %v2553_v34, %s2295_s25  ;;  %1497 = vmatpush1.bf16.msra.mxu0 %v823_v19 }
 0x130   : > { %v914_v55 = vpop.permute.xlu0 %913 }
 0x131   : > { %v461_v23 = vpop.permute.xlu1 %460  ;;  %v922_v26 = vsel %vm462_vm4, %v912_v0, %v914_v55 }
 0x132   : > { %v468_v27 = vsel %vm462_vm4, %v2606_v60, %v461_v23  ;;  %1165 = vrot.lane.b32.xlu0 %v2405_v16, %s2295_s25  ;;  %1418 = vmatprep.subr.bf16.mxu1 %v922_v26 }
 0x133   : > { %1167 = vrot.lane.b32.xlu1 %v2577_v45, %s2295_s25  ;;  %1419 = vmatpush1.bf16.msra.mxu1 %v468_v27 }
 0x134   : > { %v858_v7 = vpop.permute.xlu0 %857 }
 0x135   : > { %v860_v28 = vpop.permute.xlu1 %859  ;;  %v870_v34 = vsel %vm411_vm3, %v2795_v57, %v858_v7 }
 0x136   : > { %v871_v29 = vsel %vm411_vm3, %v858_v7, %v860_v28 }
 0x137   : > { %1498 = vmatprep.subr.bf16.mxu0 %v871_v29 }
 0x138   : > { %1499 = vmatpush1.bf16.msra.mxu0 %v870_v34  ;;  %v954_v31 = vpop.permute.xlu0 %953 }
 0x139   : > { %v956_v33 = vpop.permute.xlu1 %955 }
 0x13a   : > { %v969_v60 = vsel %vm513_vm5, %v954_v31, %v956_v33 }
 0x13b   : > { %1420 = vmatprep.subr.bf16.mxu1 %v969_v60 }
 0x13c   : > { %v504_v16 = vpop.permute.xlu0 %503 }
 0x13d   : > { %v516_v35 = vsel %vm513_vm5, %v2615_v3, %v504_v16  ;;  %v866_v45 = vpop.permute.xlu1 %865 }
 0x13e   : > { %1421 = vmatpush1.bf16.msra.mxu1 %v516_v35  ;;  %v873_v41 = vsel %vm411_vm3, %v2816_v42, %v866_v45 }
 0x140   : > { %v868_v38 = vpop.permute.xlu0 %867 }
 0x141   : > { %v962_v39 = vpop.permute.xlu1 %961  ;;  %v874_v40 = vsel %vm411_vm3, %v866_v45, %v868_v38 }
 0x142   : > { %1500 = vmatprep.subr.bf16.mxu0 %v874_v40 }
 0x143   : > { %1501 = vmatpush1.bf16.msra.mxu0 %v873_v41 }
 0x144   : > { %v964_v43 = vpop.permute.xlu0 %963 }
 0x145   : > { %v512_v51 = vpop.permute.xlu1 %511  ;;  %v972_v52 = vsel %vm513_vm5, %v962_v39, %v964_v43 }
 0x146   : > { %v519_v37 = vsel %vm513_vm5, %v2628_v9, %v512_v51  ;;  %1422 = vmatprep.subr.bf16.mxu1 %v972_v52 }
 0x147   : > { %1423 = vmatpush1.bf16.msra.mxu1 %v519_v37 }
 0x148   : > { %v908_v3 = vpop.permute.xlu0 %907 }
 0x149   : > { %v910_v54 = vpop.permute.xlu1 %909  ;;  %v920_v56 = vsel %vm462_vm4, %v906_v49, %v908_v3 }
 0x14a   : > { %v921_v57 = vsel %vm462_vm4, %v908_v3, %v910_v54 }
 0x14b   : > { %1502 = vmatprep.subr.bf16.mxu0 %v921_v57 }
 0x14c   : > { %1503 = vmatpush1.bf16.msra.mxu0 %v920_v56  ;;  %v1004_v53 = vpop.permute.xlu0 %1003 }
 0x14d   : > { %v1006_v58 = vpop.permute.xlu1 %1005 }
 0x14e   : > { %v1019_v59 = vsel %vm564_vm6, %v1004_v53, %v1006_v58 }
 0x14f   : > { %1424 = vmatprep.subr.bf16.mxu1 %v1019_v59 }
 0x150   : > { %v555_v61 = vpop.permute.xlu0 %554 }
 0x151   : > { %v567_v25 = vsel %vm564_vm6, %v2637_v14, %v555_v61  ;;  %v916_v9 = vpop.permute.xlu1 %915 }
 0x152   : > { %1425 = vmatpush1.bf16.msra.mxu1 %v567_v25  ;;  %v923_v42 = vsel %vm462_vm4, %v914_v55, %v916_v9 }
 0x154   : > { %v918_v24 = vpop.permute.xlu0 %917 }
 0x155   : > { %v1012_v1 = vpop.permute.xlu1 %1011  ;;  %v924_v4 = vsel %vm462_vm4, %v916_v9, %v918_v24 }
 0x156   : > { %1504 = vmatprep.subr.bf16.mxu0 %v924_v4 }
 0x157   : > { %1505 = vmatpush1.bf16.msra.mxu0 %v923_v42 }
 0x158   : > { %v1014_v5 = vpop.permute.xlu0 %1013 }
 0x159   : > { %v563_v6 = vpop.permute.xlu1 %562  ;;  %v1022_v8 = vsel %vm564_vm6, %v1012_v1, %v1014_v5 }
 0x15a   : > { %v570_v44 = vsel %vm564_vm6, %v2659_v32, %v563_v6  ;;  %1426 = vmatprep.subr.bf16.mxu1 %v1022_v8 }
 0x15b   : > { %1427 = vmatpush1.bf16.msra.mxu1 %v570_v44 }
 0x15c   : > { %v958_v14 = vpop.permute.xlu0 %957 }
 0x15d   : > { %v970_v50 = vsel %vm513_vm5, %v956_v33, %v958_v14  ;;  %v960_v2 = vpop.permute.xlu1 %959 }
 0x15e   : > { %v971_v10 = vsel %vm513_vm5, %v958_v14, %v960_v2 }
 0x15f   : > { %1506 = vmatprep.subr.bf16.mxu0 %v971_v10 }
 0x160   : > { %1507 = vmatpush1.bf16.msra.mxu0 %v970_v50  ;;  %v1054_v18 = vpop.permute.xlu0 %1053 }
 0x161   : > { %v1056_v49 = vpop.permute.xlu1 %1055 }
 0x162   : > { %v1069_v11 = vsel %vm615_vm8, %v1054_v18, %v1056_v49 }
 0x163   : > { %1428 = vmatprep.subr.bf16.mxu1 %v1069_v11 }
 0x164   : > { %v606_v22 = vpop.permute.xlu0 %605 }
 0x165   : > { %v618_v13 = vsel %vm615_vm8, %v2686_v48, %v606_v22  ;;  %v966_v32 = vpop.permute.xlu1 %965 }
 0x166   : > { %1429 = vmatpush1.bf16.msra.mxu1 %v618_v13  ;;  %v973_v21 = vsel %vm513_vm5, %v964_v43, %v966_v32 }
 0x168   : > { %v968_v20 = vpop.permute.xlu0 %967 }
 0x169   : > { %v1062_v63 = vpop.permute.xlu1 %1061  ;;  %v974_v0 = vsel %vm513_vm5, %v966_v32, %v968_v20 }
 0x16a   : > { %1508 = vmatprep.subr.bf16.mxu0 %v974_v0 }
 0x16b   : > { %1509 = vmatpush1.bf16.msra.mxu0 %v973_v21 }
 0x16c   : > { %v1064_v19 = vpop.permute.xlu0 %1063 }
 0x16d   : > { %v614_v55 = vpop.permute.xlu1 %613  ;;  %v1072_v23 = vsel %vm615_vm8, %v1062_v63, %v1064_v19 }
 0x16e   : > { %v621_v26 = vsel %vm615_vm8, %v2712_v62, %v614_v55  ;;  %1430 = vmatprep.subr.bf16.mxu1 %v1072_v23 }
 0x16f   : > { %1431 = vmatpush1.bf16.msra.mxu1 %v621_v26 }
 0x170   : > { %v1008_v48 = vpop.permute.xlu0 %1007 }
 0x171   : > { %v1020_v27 = vsel %vm564_vm6, %v1006_v58, %v1008_v48  ;;  %v1010_v7 = vpop.permute.xlu1 %1009 }
 0x172   : > { %v1021_v28 = vsel %vm564_vm6, %v1008_v48, %v1010_v7 }
 0x173   : > { %1510 = vmatprep.subr.bf16.mxu0 %v1021_v28 }
 0x174   : > { %1511 = vmatpush1.bf16.msra.mxu0 %v1020_v27  ;;  %v1104_v34 = vpop.permute.xlu0 %1103 }
 0x175   : > { %v1106_v29 = vpop.permute.xlu1 %1105 }
 0x176   : > { %v1119_v31 = vsel %vm666_vm10, %v1104_v34, %v1106_v29 }
 0x177   : > { %1432 = vmatprep.subr.bf16.mxu1 %v1119_v31 }
 0x178   : > { %v657_v33 = vpop.permute.xlu0 %656 }
 0x179   : > { %v669_v60 = vsel %vm666_vm10, %v2735_v12, %v657_v33  ;;  %v1016_v62 = vpop.permute.xlu1 %1015 }
 0x17a   : > { %1433 = vmatpush1.bf16.msra.mxu1 %v669_v60  ;;  %v1023_v38 = vsel %vm564_vm6, %v1014_v5, %v1016_v62  ;;  %v2280_v60 = vld [vmem:[%s3115_s2 + $0x8] sm:$0xff]  }
 0x17c   : > { %v1018_v16 = vpop.permute.xlu0 %1017 }
 0x17d   : > { %v1112_v35 = vpop.permute.xlu1 %1111  ;;  %v1024_v45 = vsel %vm564_vm6, %v1016_v62, %v1018_v16 }
 0x17e   : > { %1512 = vmatprep.subr.bf16.mxu0 %v1024_v45 }
 0x17f   : > { %1513 = vmatpush1.bf16.msra.mxu0 %v1023_v38 }
 0x180   : > { %v1114_v39 = vpop.permute.xlu0 %1113 }
 0x181   : > { %v665_v40 = vpop.permute.xlu1 %664  ;;  %v1122_v41 = vsel %vm666_vm10, %v1112_v35, %v1114_v39 }
 0x182   : > { %v672_v43 = vsel %vm666_vm10, %v2758_v30, %v665_v40  ;;  %1434 = vmatprep.subr.bf16.mxu1 %v1122_v41 }
 0x183   : > { %1435 = vmatpush1.bf16.msra.mxu1 %v672_v43 }
 0x184   : > { %v1058_v12 = vpop.permute.xlu0 %1057 }
 0x185   : > { %v1070_v51 = vsel %vm615_vm8, %v1056_v49, %v1058_v12  ;;  %v1060_v52 = vpop.permute.xlu1 %1059 }
 0x186   : > { %v1071_v37 = vsel %vm615_vm8, %v1058_v12, %v1060_v52  ;;  %1437 = vmatmul.mubr.bf16.vlgmr.msra.gmra.mrb[4].mxu1 %v2782_v47 }
 0x187   : > { %1514 = vmatprep.subr.bf16.mxu0 %v1071_v37  ;;  %1479 = vmatprep.mubr.bf16.mxu1 %v2296_v17 }
 0x188   : > { %1515 = vmatpush1.bf16.msra.mxu0 %v1070_v51  ;;  %v1066_v3 = vpop.permute.xlu0 %1065 }
 0x189   : > { %v1073_v54 = vsel %vm615_vm8, %v1064_v19, %v1066_v3  ;;  %v1068_v56 = vpop.permute.xlu1 %1067 }
 0x18a   : > { %v1074_v30 = vsel %vm615_vm8, %v1066_v3, %v1068_v56 }
 0x18b   : > { %1516 = vmatprep.subr.bf16.mxu0 %v1074_v30 }
 0x18c   : > { %1517 = vmatpush1.bf16.msra.mxu0 %v1073_v54  ;;  %v1154_v57 = vpop.permute.xlu0 %1153 }
 0x18d   : > { %v1156_v53 = vpop.permute.xlu1 %1155 }
 0x18e   : > { %v1169_v58 = vsel %vm717_vm7, %v1154_v57, %v1156_v53 }
 0x18f   : > { %1447 = vmatprep.subr.bf16.mxu1 %v1169_v58 }
 0x190   : > { %v708_v59 = vpop.permute.xlu0 %707 }
 0x191   : > { %v720_v61 = vsel %vm717_vm7, %v2645_v15, %v708_v59  ;;  %v1108_v25 = vpop.permute.xlu1 %1107 }
 0x192   : > { %1448 = vmatpush1.bf16.msra.mxu1 %v720_v61  ;;  %v1120_v4 = vsel %vm666_vm10, %v1106_v29, %v1108_v25 }
 0x194   : > { %v1110_v9 = vpop.permute.xlu0 %1109 }
 0x195   : > { %v1162_v24 = vpop.permute.xlu1 %1161  ;;  %v1121_v1 = vsel %vm666_vm10, %v1108_v25, %v1110_v9 }
 0x196   : > { %1518 = vmatprep.subr.bf16.mxu0 %v1121_v1 }
 0x197   : > { %1519 = vmatpush1.bf16.msra.mxu0 %v1120_v4 }
 0x198   : > { %v1164_v42 = vpop.permute.xlu0 %1163 }
 0x199   : > { %v716_v5 = vpop.permute.xlu1 %715  ;;  %v1172_v6 = vsel %vm717_vm7, %v1162_v24, %v1164_v42 }
 0x19a   : > { %v723_v8 = vsel %vm717_vm7, %v2667_v36, %v716_v5  ;;  %1449 = vmatprep.subr.bf16.mxu1 %v1172_v6 }
 0x19b   : > { %1450 = vmatpush1.bf16.msra.mxu1 %v723_v8 }
 0x19c   : > { %v1116_v15 = vpop.permute.xlu0 %1115 }
 0x19d   : > { %v1123_v44 = vsel %vm666_vm10, %v1114_v39, %v1116_v15  ;;  %v1118_v14 = vpop.permute.xlu1 %1117 }
 0x19e   : > { %2202 = vmatmul.mubr.msk.bf16.vlgmr.msra.gmra.mrb[4].mxu1 %vm1314_vm9, %v2682_v46  ;;  %v1124_v50 = vsel %vm666_vm10, %v1116_v15, %v1118_v14 }
 0x19f   : > { %1520 = vmatprep.subr.bf16.mxu0 %v1124_v50  ;;  %1647 = vmatprep.mubr.bf16.mxu1 %v2296_v17 }
 0x1a0   : > { %1521 = vmatpush1.bf16.msra.mxu0 %v1123_v44  ;;  %v1158_v2 = vpop.permute.xlu0 %1157 }
 0x1a1   : > { %v1170_v10 = vsel %vm717_vm7, %v1156_v53, %v1158_v2  ;;  %v1160_v18 = vpop.permute.xlu1 %1159 }
 0x1a2   : > { %v1171_v36 = vsel %vm717_vm7, %v1158_v2, %v1160_v18 }
 0x1a3   : > { %1523 = vmatmul.mubr.bf16.vlgmr.msra.gmra.mrb[4].mxu0 %v2782_v47  ;;  %1533 = vmatprep.subr.bf16.mxu0 %v1171_v36 }
 0x1a4   : > { %1534 = vmatpush1.bf16.msra.mxu0 %v1170_v10  ;;  %v1166_v49 = vpop.permute.xlu0 %1165  ;;  %1565 = vmatprep.mubr.bf16.mxu0 %v2296_v17 }
 0x1a5   : > { %v1173_v11 = vsel %vm717_vm7, %v1164_v42, %v1166_v49  ;;  %v1168_v22 = vpop.permute.xlu1 %1167 }
 0x1a6   : > { %v1174_v13 = vsel %vm717_vm7, %v1166_v49, %v1168_v22 }
 0x1a7   : > { %1535 = vmatprep.subr.bf16.mxu0 %v1174_v13 }
 0x1a8   : > { %1536 = vmatpush1.bf16.msra.mxu0 %v1173_v11 }
 0x1af   : > { %2203 = vmatmul.mubr.msk.bf16.vlgmr.msra.gmra.mrb[4].mxu0 %vm1314_vm9, %v2682_v46  ;;  %v2279_v46 = vld [vmem:[%s3115_s2] sm:$0xff]  }
 0x1b1   : > { %v1395_v32 = vpop.f32.mrb[0].mxu1 }
 0x1b2   : > { %v1397_v20 = vpop.f32.mrb[1].mxu1 }
 0x1b3   : > { %v1399_v63 = vpop.f32.mrb[2].mxu1 }
 0x1b4   : > { %v1401_v0 = vpop.f32.mrb[3].mxu1 }
 0x1e1   : > { %v1352_v47 = vpop.f32.mrb[0].mxu0 }
 0x1e2   : > { %v1396_v21 = vadd.f32 %v1395_v32, %v1352_v47  ;;  %v1354_v19 = vpop.f32.mrb[1].mxu0  ;;  %v1774_v47 = vld [vmem:[%s2334_s18] sm:$0xff] }
 0x1e3   : > { %v1398_v55 = vadd.f32 %v1397_v20, %v1354_v19  ;;  %v1356_v23 = vpop.f32.mrb[2].mxu0 }
 0x1e4   : > { %v1576_v26 = vmax.f32 %v1396_v21, 0.0  ;;  %v1400_v48 = vadd.f32 %v1399_v63, %v1356_v23  ;;  %v1358_v27 = vpop.f32.mrb[3].mxu0  ;;  %v1775_v21 = vld [vmem:[%s2334_s18 + $0x8] sm:$0xff] }
 0x1e5   : > { %v1577_v7 = vmax.f32 %v1398_v55, 0.0  ;;  %v1402_v28 = vadd.f32 %v1401_v0, %v1358_v27  ;;  %v1778_v27 = vld [vmem:[%s2334_s18 + $0x20] sm:$0xff] }
 0x1e6   : > { %v1582_v34 = vmax.f32 %v1400_v48, 0.0 }
 0x1e7   : > { %v1583_v29 = vmax.f32 %v1402_v28, 0.0 }
 0x1e8   : > { %v1588_v31 = vpack.c.bf16 %v1582_v34, %v1576_v26 }
 0x1e9   : > { %v1589_v33 = vpack.c.bf16 %v1583_v29, %v1577_v7  ;;  %v1779_v7 = vld [vmem:[%s2334_s18 + $0x28] sm:$0xff] }
 0x1eb   : > { %1615 = vmatprep.subr.bf16.mxu1 %v1589_v33  ;;  %v1783_v33 = vld [vmem:[%s2334_s18 + $0x48] sm:$0xff] }
 0x1ec   : > { %1616 = vmatpush1.bf16.msra.mxu1 %v1588_v31  ;;  %v1782_v31 = vld [vmem:[%s2334_s18 + $0x40] sm:$0xff] }
 0x1ef   : > { %2206 = vmatmul.mubr.msk.bf16.vlgmr.msra.gmra.mrb[8].mxu1 %vm1608_vm11, %v2279_v46 }
 0x1f0   : > { %1657 = vmatprep.mubr.bf16.mxu1 %v2296_v17 }
 0x1f7   : > { %2207 = vmatmul.mubr.msk.bf16.gmra.mrb[12].mxu1 %vm1608_vm11, %v2280_v60 }
 0x1f8   : > { %1700 = vmatprep.mubr.bf16.mxu1 %v2296_v17 }
 0x271   : > { %v1481_v62 = vpop.f32.mrb[4].mxu1 }
 0x272   : > { %v1483_v16 = vpop.f32.mrb[5].mxu1  ;;  %v1578_v45 = vmax.f32 %v1481_v62, 0.0 }
 0x273   : > { %v1485_v35 = vpop.f32.mrb[6].mxu1  ;;  %v1579_v40 = vmax.f32 %v1483_v16, 0.0 }
 0x274   : > { %v1584_v38 = vmax.f32 %v1485_v35, 0.0  ;;  %v1487_v39 = vpop.f32.mrb[7].mxu1 }
 0x275   : > { %v1585_v41 = vmax.f32 %v1487_v39, 0.0 }
 0x276   : > { %v1590_v43 = vpack.c.bf16 %v1584_v38, %v1578_v45  ;;  %v1786_v45 = vld [vmem:[%s2334_s18 + $0x60] sm:$0xff]  ;;  %v1787_v38 = vld [vmem:[%s2334_s18 + $0x68] sm:$0xff] }
 0x277   : > { %v1591_v12 = vpack.c.bf16 %v1585_v41, %v1579_v40 }
 0x279   : > { %1668 = vmatprep.subr.bf16.mxu1 %v1591_v12  ;;  %v1776_v12 = vld [vmem:[%s2334_s18 + $0x10] sm:$0xff] }
 0x27a   : > { %1669 = vmatpush1.bf16.msra.mxu1 %v1590_v43  ;;  %v1777_v43 = vld [vmem:[%s2334_s18 + $0x18] sm:$0xff] }
 0x27d   : > { %2208 = vmatmul.mubr.msk.bf16.vlgmr.msra.gmra.mrb[16].mxu1 %vm1608_vm11, %v2279_v46 }
 0x27e   : > { %1710 = vmatprep.mubr.bf16.mxu1 %v2296_v17 }
 0x282   : > { %v1567_v51 = vpop.f32.mrb[4].mxu0 }
 0x283   : > { %v1569_v52 = vpop.f32.mrb[5].mxu0  ;;  %v1580_v3 = vmax.f32 %v1567_v51, 0.0 }
 0x284   : > { %v1571_v37 = vpop.f32.mrb[6].mxu0  ;;  %v1581_v30 = vmax.f32 %v1569_v52, 0.0 }
 0x285   : > { %v1586_v54 = vmax.f32 %v1571_v37, 0.0  ;;  %v1573_v56 = vpop.f32.mrb[7].mxu0  ;;  %2209 = vmatmul.mubr.msk.bf16.gmra.mrb[20].mxu1 %vm1608_vm11, %v2280_v60 }
 0x286   : > { %v1587_v57 = vmax.f32 %v1573_v56, 0.0  ;;  %1753 = vmatprep.mubr.bf16.mxu1 %v2296_v17 }
 0x287   : > { %v1592_v53 = vpack.c.bf16 %v1586_v54, %v1580_v3  ;;  %v1781_v54 = vld [vmem:[%s2334_s18 + $0x38] sm:$0xff] }
 0x288   : > { %v1593_v58 = vpack.c.bf16 %v1587_v57, %v1581_v30  ;;  %v2212_v30 = vld [vmem:[%s2334_s18 + $0x80] sm:$0xff] }
 0x28a   : > { %1721 = vmatprep.subr.bf16.mxu1 %v1593_v58 }
 0x28b   : > { %1722 = vmatpush1.bf16.msra.mxu1 %v1592_v53 }
 0x28e   : > { %2210 = vmatmul.mubr.msk.bf16.vlgmr.msra.gmra.mrb[24].mxu1 %vm1608_vm11, %v2279_v46 }
 0x28f   : > { %1763 = vmatprep.mubr.bf16.mxu1 %v2296_v17 }
 0x296   : > { %2211 = vmatmul.mubr.msk.bf16.gmra.mrb[28].mxu1 %vm1608_vm11, %v2280_v60 }
 0x2c2   : > { %v1649_v59 = vpop.f32.mrb[8].mxu1 }
 0x2c3   : > { %v1651_v61 = vpop.f32.mrb[9].mxu1  ;;  %1802 = vrot.lane.b32.xlu0 %v1649_v59, %s2299_s11 }
 0x2c4   : > { %1804 = vrot.lane.b32.xlu1 %v1651_v61, %s2299_s11  ;;  %v1653_v25 = vpop.f32.mrb[10].mxu1  ;;  %v1785_v61 = vld [vmem:[%s2334_s18 + $0x58] sm:$0xff] }
 0x2c5   : > { %v1655_v9 = vpop.f32.mrb[11].mxu1 }
 0x2c7   : > { %1810 = vrot.lane.b32.xlu0 %v1655_v9, %s2299_s11 }
 0x2c8   : > { %1808 = vrot.lane.b32.xlu1 %v1653_v25, %s2299_s11  ;;  %v1780_v25 = vld [vmem:[%s2334_s18 + $0x30] sm:$0xff] }
 0x2ca   : > { %v1659_v24 = vpop.f32.mrb[12].mxu1 }
 0x2cb   : > { %v1661_v1 = vpop.f32.mrb[13].mxu1  ;;  %1814 = vrot.lane.b32.xlu0 %v1659_v24, %s2299_s11 }
 0x2cc   : > { %1816 = vrot.lane.b32.xlu1 %v1661_v1, %s2299_s11  ;;  %v1663_v17 = vpop.f32.mrb[14].mxu1 }
 0x2cd   : > { %v1665_v4 = vpop.f32.mrb[15].mxu1 }
 0x2cf   : > { %1822 = vrot.lane.b32.xlu0 %v1665_v4, %s2299_s11  ;;  %v1789_v4 = vld [vmem:[%s2334_s18 + $0x78] sm:$0xff] }
 0x2d0   : > { %1820 = vrot.lane.b32.xlu1 %v1663_v17, %s2299_s11 }
 0x335   : > { %v1803_v18 = vpop.permute.xlu0 %1802 }
 0x336   : > { %v1805_v49 = vpop.permute.xlu1 %1804  ;;  %v1851_v55 = vadd.f32 %v1803_v18, %v1774_v47 }
 0x337   : > { %v1827_v19 = vsel %vm1826_vm12, %v1803_v18, %v1805_v49 }
 0x338   : > { %v1852_v23 = vadd.f32 %v1827_v19, %v1775_v21  ;;  %v2217_v19 = vld [vmem:[%s2334_s18 + $0xa8] sm:$0xff] }
 0x339   : > { %v1811_v22 = vpop.permute.xlu0 %1810 }
 0x33a   : > { %v1809_v32 = vpop.permute.xlu1 %1808 }
 0x33b   : > { %v1829_v28 = vsel %vm1826_vm12, %v1809_v32, %v1811_v22  ;;  %v1855_v34 = vadd.f32 %v1809_v32, %v1778_v27  ;;  %v2224_v27 = vld [vmem:[%s2334_s18 + $0xe0] sm:$0xff] }
 0x33c   : > { %v1856_v29 = vadd.f32 %v1829_v28, %v1779_v7  ;;  %v2219_v28 = vld [vmem:[%s2334_s18 + $0xb8] sm:$0xff] }
 0x33d   : > { %v1815_v26 = vpop.permute.xlu0 %1814 }
 0x33e   : > { %v1817_v48 = vpop.permute.xlu1 %1816  ;;  %v1859_v16 = vadd.f32 %v1815_v26, %v1782_v31 }
 0x33f   : > { %v1831_v46 = vsel %vm1826_vm12, %v1815_v26, %v1817_v48 }
 0x340   : > { %v1860_v35 = vadd.f32 %v1831_v46, %v1783_v33  ;;  %v2214_v33 = vld [vmem:[%s2334_s18 + $0x90] sm:$0xff] }
 0x341   : > { %v2979_v60 = vpop.permute.xlu0 %1822 }
 0x342   : > { %v1821_v62 = vpop.permute.xlu1 %1820 }
 0x343   : > { %v1833_v39 = vsel %vm1826_vm12, %v1821_v62, %v2979_v60  ;;  %v1863_v40 = vadd.f32 %v1821_v62, %v1786_v45  ;;  %v2221_v62 = vld [vmem:[%s2334_s18 + $0xc8] sm:$0xff] }
 0x344   : > { %v1864_v41 = vadd.f32 %v1833_v39, %v1787_v38  ;;  %v2218_v39 = vld [vmem:[%s2334_s18 + $0xb0] sm:$0xff] }
 0x350   : > { %v1702_v42 = vpop.f32.mrb[16].mxu1 }
 0x351   : > { %1806 = vrot.lane.b32.xlu0 %v1702_v42, %s2299_s11  ;;  %v1704_v5 = vpop.f32.mrb[17].mxu1 }
 0x352   : > { %v1706_v6 = vpop.f32.mrb[18].mxu1 }
 0x353   : > { %1812 = vrot.lane.b32.xlu1 %v1706_v6, %s2299_s11  ;;  %v1708_v8 = vpop.f32.mrb[19].mxu1 }
 0x355   : > { %1981 = vrot.lane.b32.xlu0 %v1704_v5, %s2299_s11  ;;  %v2216_v5 = vld [vmem:[%s2334_s18 + $0xa0] sm:$0xff] }
 0x357   : > { %1987 = vrot.lane.b32.xlu1 %v1708_v8, %s2299_s11 }
 0x358   : > { %v1712_v15 = vpop.f32.mrb[20].mxu1 }
 0x359   : > { %1818 = vrot.lane.b32.xlu0 %v1712_v15, %s2299_s11  ;;  %v1714_v44 = vpop.f32.mrb[21].mxu1 }
 0x35a   : > { %v1716_v14 = vpop.f32.mrb[22].mxu1 }
 0x35b   : > { %1824 = vrot.lane.b32.xlu1 %v1716_v14, %s2299_s11  ;;  %v1718_v50 = vpop.f32.mrb[23].mxu1  ;;  %v1784_v14 = vld [vmem:[%s2334_s18 + $0x50] sm:$0xff] }
 0x35d   : > { %1993 = vrot.lane.b32.xlu0 %v1714_v44, %s2299_s11 }
 0x35f   : > { %1999 = vrot.lane.b32.xlu1 %v1718_v50, %s2299_s11 }
 0x361   : > { %v1755_v2 = vpop.f32.mrb[24].mxu1 }
 0x362   : > { %v1757_v10 = vpop.f32.mrb[25].mxu1 }
 0x363   : > { %1985 = vrot.lane.b32.xlu0 %v1757_v10, %s2299_s11  ;;  %1983 = vrot.lane.b32.xlu1 %v1755_v2, %s2299_s11  ;;  %v1759_v36 = vpop.f32.mrb[26].mxu1  ;;  %v2213_v2 = vld [vmem:[%s2334_s18 + $0x88] sm:$0xff] }
 0x364   : > { %v1761_v11 = vpop.f32.mrb[27].mxu1 }
 0x367   : > { %1989 = vrot.lane.b32.xlu0 %v1759_v36, %s2299_s11  ;;  %1991 = vrot.lane.b32.xlu1 %v1761_v11, %s2299_s11 }
 0x369   : > { %v1765_v13 = vpop.f32.mrb[28].mxu1 }
 0x36a   : > { %v1767_v20 = vpop.f32.mrb[29].mxu1 }
 0x36b   : > { %1997 = vrot.lane.b32.xlu0 %v1767_v20, %s2299_s11  ;;  %1995 = vrot.lane.b32.xlu1 %v1765_v13, %s2299_s11  ;;  %v1769_v63 = vpop.f32.mrb[30].mxu1  ;;  %v2215_v13 = vld [vmem:[%s2334_s18 + $0x98] sm:$0xff] }
 0x36c   : > { %v1771_v0 = vpop.f32.mrb[31].mxu1 }
 0x36f   : > { %2001 = vrot.lane.b32.xlu0 %v1769_v63, %s2299_s11  ;;  %2003 = vrot.lane.b32.xlu1 %v1771_v0, %s2299_s11  ;;  %v1788_v0 = vld [vmem:[%s2334_s18 + $0x70] sm:$0xff] }
 0x373   : > { %1883 = vrot.lane.b32.xlu0 %v1851_v55, %s2293_s23  ;;  %1885 = vrot.lane.b32.xlu1 %v1852_v23, %s2293_s23 }
 0x377   : > { %1891 = vrot.lane.b32.xlu0 %v1855_v34, %s2293_s23  ;;  %1893 = vrot.lane.b32.xlu1 %v1856_v29, %s2293_s23 }
 0x37b   : > { %1899 = vrot.lane.b32.xlu0 %v1859_v16, %s2293_s23  ;;  %1901 = vrot.lane.b32.xlu1 %v1860_v35, %s2293_s23 }
 0x37f   : > { %1907 = vrot.lane.b32.xlu0 %v1863_v40, %s2293_s23  ;;  %1909 = vrot.lane.b32.xlu1 %v1864_v41, %s2293_s23 }
 0x3c3   : > { %v1807_v51 = vpop.permute.xlu0 %1806 }
 0x3c4   : > { %v1828_v52 = vsel %vm1826_vm12, %v1805_v49, %v1807_v51  ;;  %v1854_v37 = vadd.f32 %v1807_v51, %v1777_v43  ;;  %v2220_v49 = vld [vmem:[%s2334_s18 + $0xc0] sm:$0xff] }
 0x3c5   : > { %v1853_v3 = vadd.f32 %v1828_v52, %v1776_v12  ;;  %v1813_v56 = vpop.permute.xlu1 %1812  ;;  %v2223_v12 = vld [vmem:[%s2334_s18 + $0xd8] sm:$0xff] }
 0x3c6   : > { %1889 = vrot.lane.b32.xlu1 %v1854_v37, %s2293_s23  ;;  %v1858_v53 = vadd.f32 %v1813_v56, %v1781_v54  ;;  %v1830_v9 = vsel %vm1826_vm12, %v1811_v22, %v1813_v56 }
 0x3c7   : > { %v1982_v57 = vpop.permute.xlu0 %1981  ;;  %1887 = vrot.lane.b32.xlu0 %v1853_v3, %s2293_s23  ;;  %v1857_v17 = vadd.f32 %v1830_v9, %v1780_v25  ;;  %v2222_v3 = vld [vmem:[%s2334_s18 + $0xd0] sm:$0xff] }
 0x3c8   : > { %v2029_v58 = vadd.f32 %v2212_v30, %v1982_v57  ;;  %v2226_v25 = vld [vmem:[%s2334_s18 + $0xf0] sm:$0xff] }
 0x3c9   : > { %v1988_v59 = vpop.permute.xlu1 %1987 }
 0x3ca   : > { %1897 = vrot.lane.b32.xlu1 %v1858_v53, %s2293_s23  ;;  %v2033_v15 = vadd.f32 %v2216_v5, %v1988_v59 }
 0x3cb   : > { %v1819_v24 = vpop.permute.xlu0 %1818  ;;  %2061 = vrot.lane.b32.xlu0 %v2029_v58, %s2293_s23 }
 0x3cc   : > { %v1862_v1 = vadd.f32 %v1819_v24, %v1785_v61  ;;  %v1832_v50 = vsel %vm1826_vm12, %v1817_v48, %v1819_v24 }
 0x3cd   : > { %v1825_v42 = vpop.permute.xlu1 %1824  ;;  %v1861_v10 = vadd.f32 %v1832_v50, %v1784_v14 }
 0x3ce   : > { %1905 = vrot.lane.b32.xlu1 %v1862_v1, %s2293_s23  ;;  %v1866_v8 = vadd.f32 %v1825_v42, %v1789_v4  ;;  %v1834_v47 = vsel %vm1826_vm12, %v2979_v60, %v1825_v42 }
 0x3cf   : > { %1895 = vrot.lane.b32.xlu0 %v1857_v17, %s2293_s23  ;;  %v1994_v6 = vpop.permute.xlu0 %1993  ;;  %v1865_v23 = vadd.f32 %v1834_v47, %v1788_v0  ;;  %v2227_v17 = vld [vmem:[%s2334_s18 + $0xf8] sm:$0xff] }
 0x3d0   : > { %v2037_v32 = vadd.f32 %v2220_v49, %v1994_v6 }
 0x3d1   : > { %v3007_v44 = vpop.permute.xlu1 %1999 }
 0x3d2   : > { %1913 = vrot.lane.b32.xlu1 %v1866_v8, %s2293_s23  ;;  %v2041_v34 = vadd.f32 %v2224_v27, %v3007_v44 }
 0x3d3   : > { %2069 = vrot.lane.b32.xlu0 %v2033_v15, %s2293_s23 }
 0x3d5   : > { %v1986_v18 = vpop.permute.xlu0 %1985  ;;  %v1984_v36 = vpop.permute.xlu1 %1983 }
 0x3d6   : > { %v2005_v11 = vsel %vm1826_vm12, %v1982_v57, %v1984_v36  ;;  %v2032_v21 = vadd.f32 %v2215_v13, %v1986_v18  ;;  %v2006_v46 = vsel %vm1826_vm12, %v1984_v36, %v1986_v18  ;;  %v2225_v57 = vld [vmem:[%s2334_s18 + $0xe8] sm:$0xff] }
 0x3d7   : > { %v2030_v22 = vadd.f32 %v2213_v2, %v2005_v11  ;;  %1903 = vrot.lane.b32.xlu0 %v1861_v10, %s2293_s23  ;;  %v2031_v35 = vadd.f32 %v2214_v33, %v2006_v46 }
 0x3d9   : > { %v1990_v20 = vpop.permute.xlu0 %1989  ;;  %2063 = vrot.lane.b32.xlu1 %v2030_v22, %s2293_s23  ;;  %v1992_v63 = vpop.permute.xlu1 %1991 }
 0x3da   : > { %v2007_v55 = vsel %vm1826_vm12, %v1988_v59, %v1990_v20  ;;  %v2036_v60 = vadd.f32 %v2219_v28, %v1992_v63  ;;  %v2008_v40 = vsel %vm1826_vm12, %v1990_v20, %v1992_v63 }
 0x3db   : > { %2077 = vrot.lane.b32.xlu0 %v2037_v32, %s2293_s23  ;;  %v2034_v7 = vadd.f32 %v2217_v19, %v2007_v55  ;;  %v2035_v51 = vadd.f32 %v2218_v39, %v2008_v40 }
 0x3dd   : > { %v1998_v26 = vpop.permute.xlu0 %1997  ;;  %2067 = vrot.lane.b32.xlu1 %v2032_v21, %s2293_s23  ;;  %v1996_v48 = vpop.permute.xlu1 %1995 }
 0x3de   : > { %v2009_v16 = vsel %vm1826_vm12, %v1994_v6, %v1996_v48  ;;  %v2010_v54 = vsel %vm1826_vm12, %v1996_v48, %v1998_v26  ;;  %v2040_v30 = vadd.f32 %v2223_v12, %v1998_v26 }
 0x3df   : > { %1911 = vrot.lane.b32.xlu0 %v1865_v23, %s2293_s23  ;;  %v2038_v43 = vadd.f32 %v2221_v62, %v2009_v16  ;;  %v2039_v58 = vadd.f32 %v2222_v3, %v2010_v54 }
 0x3e1   : > { %v2002_v29 = vpop.permute.xlu0 %2001  ;;  %2071 = vrot.lane.b32.xlu1 %v2034_v7, %s2293_s23  ;;  %v2004_v31 = vpop.permute.xlu1 %2003 }
 0x3e2   : > { %v2011_v53 = vsel %vm1826_vm12, %v3007_v44, %v2002_v29  ;;  %v2012_v9 = vsel %vm1826_vm12, %v2002_v29, %v2004_v31  ;;  %v2044_v8 = vadd.f32 %v2227_v17, %v2004_v31 }
 0x3e3   : > { %2085 = vrot.lane.b32.xlu0 %v2041_v34, %s2293_s23  ;;  %v2042_v1 = vadd.f32 %v2225_v57, %v2011_v53  ;;  %v2043_v4 = vadd.f32 %v2226_v25, %v2012_v9 }
 0x3e5   : > { %2075 = vrot.lane.b32.xlu1 %v2036_v60, %s2293_s23  ;;  %v1884_v45 = vpop.permute.xlu0 %1883  ;;  %v1886_v38 = vpop.permute.xlu1 %1885 }
 0x3e6   : > { %v1916_v41 = vsel %vm513_vm5, %v1884_v45, %v1886_v38 }
 0x3e7   : > { %2065 = vrot.lane.b32.xlu0 %v2031_v35, %s2293_s23  ;;  %1940 = vst [vmem:[%s3040_s14] sm:$0xff] %v1916_v41 }
 0x3e9   : > { %2079 = vrot.lane.b32.xlu1 %v2038_v43, %s2293_s23  ;;  %v1892_v52 = vpop.permute.xlu0 %1891  ;;  %v1894_v37 = vpop.permute.xlu1 %1893 }
 0x3ea   : > { %v1919_v56 = vsel %vm513_vm5, %v1892_v52, %v1894_v37 }
 0x3eb   : > { %2073 = vrot.lane.b32.xlu0 %v2035_v51, %s2293_s23  ;;  %1943 = vst [vmem:[%s3040_s14 + $0x18] sm:$0xff] %v1919_v56 }
 0x3ed   : > { %2083 = vrot.lane.b32.xlu1 %v2040_v30, %s2293_s23  ;;  %v1900_v59 = vpop.permute.xlu0 %1899  ;;  %v1902_v61 = vpop.permute.xlu1 %1901 }
 0x3ee   : > { %v1922_v24 = vsel %vm513_vm5, %v1900_v59, %v1902_v61 }
 0x3ef   : > { %2081 = vrot.lane.b32.xlu0 %v2039_v58, %s2293_s23  ;;  %1946 = vst [vmem:[%s3040_s14 + $0x30] sm:$0xff] %v1922_v24 }
 0x3f1   : > { %2087 = vrot.lane.b32.xlu1 %v2042_v1, %s2293_s23  ;;  %v1908_v42 = vpop.permute.xlu0 %1907  ;;  %v1910_v5 = vpop.permute.xlu1 %1909 }
 0x3f2   : > { %v1925_v6 = vsel %vm513_vm5, %v1908_v42, %v1910_v5 }
 0x3f3   : > { %2089 = vrot.lane.b32.xlu0 %v2043_v4, %s2293_s23  ;;  %1949 = vst [vmem:[%s3040_s14 + $0x48] sm:$0xff] %v1925_v6 }
 0x3f5   : > { %2091 = vrot.lane.b32.xlu1 %v2044_v8, %s2293_s23 }
 0x438   : > { %v1890_v15 = vpop.permute.xlu1 %1889 }
 0x439   : > { %v1888_v44 = vpop.permute.xlu0 %1887 }
 0x43a   : > { %v1917_v14 = vsel %vm513_vm5, %v1886_v38, %v1888_v44  ;;  %v1918_v50 = vsel %vm513_vm5, %v1888_v44, %v1890_v15 }
 0x43b   : > { %1941 = vst [vmem:[%s3040_s14 + $0x8] sm:$0xff] %v1917_v14  ;;  %1942 = vst [vmem:[%s3040_s14 + $0x10] sm:$0xff] %v1918_v50 }
 0x43c   : > { %v1898_v2 = vpop.permute.xlu1 %1897 }
 0x43d   : > { %v2062_v10 = vpop.permute.xlu0 %2061 }
 0x440   : > { %v1906_v36 = vpop.permute.xlu1 %1905 }
 0x441   : > { %v1896_v18 = vpop.permute.xlu0 %1895 }
 0x442   : > { %v1920_v49 = vsel %vm513_vm5, %v1894_v37, %v1896_v18  ;;  %v1921_v11 = vsel %vm513_vm5, %v1896_v18, %v1898_v2 }
 0x443   : > { %1944 = vst [vmem:[%s3040_s14 + $0x20] sm:$0xff] %v1920_v49  ;;  %1945 = vst [vmem:[%s3040_s14 + $0x28] sm:$0xff] %v1921_v11 }
 0x444   : > { %v1914_v13 = vpop.permute.xlu1 %1913 }
 0x445   : > { %v2070_v22 = vpop.permute.xlu0 %2069 }
 0x449   : > { %v1904_v32 = vpop.permute.xlu0 %1903 }
 0x44a   : > { %v1923_v20 = vsel %vm513_vm5, %v1902_v61, %v1904_v32  ;;  %v1924_v63 = vsel %vm513_vm5, %v1904_v32, %v1906_v36 }
 0x44b   : > { %1947 = vst [vmem:[%s3040_s14 + $0x38] sm:$0xff] %v1923_v20  ;;  %1948 = vst [vmem:[%s3040_s14 + $0x40] sm:$0xff] %v1924_v63  ;;  %v2064_v0 = vpop.permute.xlu1 %2063 }
 0x44c   : > { %v2093_v47 = vsel %vm513_vm5, %v2062_v10, %v2064_v0 }
 0x44d   : > { %2228 = vst [vmem:[%s3040_s14 + $0x60] sm:$0xff] %v2093_v47  ;;  %v2078_v21 = vpop.permute.xlu0 %2077 }
 0x44f   : > { %v2068_v19 = vpop.permute.xlu1 %2067 }
 0x451   : > { %v1912_v55 = vpop.permute.xlu0 %1911 }
 0x452   : > { %v1926_v23 = vsel %vm513_vm5, %v1910_v5, %v1912_v55  ;;  %v1927_v26 = vsel %vm513_vm5, %v1912_v55, %v1914_v13 }
 0x453   : > { %1950 = vst [vmem:[%s3040_s14 + $0x50] sm:$0xff] %v1926_v23  ;;  %1951 = vst [vmem:[%s3040_s14 + $0x58] sm:$0xff] %v1927_v26  ;;  %v2072_v48 = vpop.permute.xlu1 %2071 }
 0x454   : > { %v2096_v27 = vsel %vm513_vm5, %v2070_v22, %v2072_v48 }
 0x455   : > { %2231 = vst [vmem:[%s3040_s14 + $0x78] sm:$0xff] %v2096_v27  ;;  %v2086_v7 = vpop.permute.xlu0 %2085 }
 0x457   : > { %v2076_v28 = vpop.permute.xlu1 %2075 }
 0x459   : > { %v2066_v34 = vpop.permute.xlu0 %2065 }
 0x45a   : > { %v2094_v29 = vsel %vm513_vm5, %v2064_v0, %v2066_v34  ;;  %v2095_v31 = vsel %vm513_vm5, %v2066_v34, %v2068_v19 }
 0x45b   : > { %2229 = vst [vmem:[%s3040_s14 + $0x68] sm:$0xff] %v2094_v29  ;;  %2230 = vst [vmem:[%s3040_s14 + $0x70] sm:$0xff] %v2095_v31  ;;  %v2080_v33 = vpop.permute.xlu1 %2079 }
 0x45c   : > { %v2099_v46 = vsel %vm513_vm5, %v2078_v21, %v2080_v33 }
 0x45d   : > { %2234 = vst [vmem:[%s3040_s14 + $0x90] sm:$0xff] %v2099_v46  ;;  %v2074_v60 = vpop.permute.xlu0 %2073 }
 0x45e   : > { %v2097_v62 = vsel %vm513_vm5, %v2072_v48, %v2074_v60  ;;  %v2098_v16 = vsel %vm513_vm5, %v2074_v60, %v2076_v28 }
 0x45f   : > { %2232 = vst [vmem:[%s3040_s14 + $0x80] sm:$0xff] %v2097_v62  ;;  %2233 = vst [vmem:[%s3040_s14 + $0x88] sm:$0xff] %v2098_v16  ;;  %v2084_v35 = vpop.permute.xlu1 %2083 }
 0x461   : > { %v2082_v45 = vpop.permute.xlu0 %2081 }
 0x462   : > { %v2100_v38 = vsel %vm513_vm5, %v2080_v33, %v2082_v45  ;;  %v2101_v39 = vsel %vm513_vm5, %v2082_v45, %v2084_v35 }
 0x463   : > { %2235 = vst [vmem:[%s3040_s14 + $0x98] sm:$0xff] %v2100_v38  ;;  %2236 = vst [vmem:[%s3040_s14 + $0xa0] sm:$0xff] %v2101_v39  ;;  %v2088_v40 = vpop.permute.xlu1 %2087 }
 0x464   : > { %v2102_v41 = vsel %vm513_vm5, %v2086_v7, %v2088_v40 }
 0x465   : > { %2237 = vst [vmem:[%s3040_s14 + $0xa8] sm:$0xff] %v2102_v41  ;;  %v2090_v43 = vpop.permute.xlu0 %2089 }
 0x466   : > { %v2103_v12 = vsel %vm513_vm5, %v2088_v40, %v2090_v43 }
 0x467   : > { %2238 = vst [vmem:[%s3040_s14 + $0xb0] sm:$0xff] %v2103_v12  ;;  %v2092_v51 = vpop.permute.xlu1 %2091 }
 0x468   : > { %v2104_v52 = vsel %vm513_vm5, %v2090_v43, %v2092_v51 }
 0x469   : > { %2239 = vst [vmem:[%s3040_s14 + $0xb8] sm:$0xff] %v2104_v52 }
 0x46a PF: > { %s13_s12 = sadd.s32 1, %s2287_s12  }
 0x46b   : > { %p10_p4 = scmp.ge.s32.totalorder %s13_s12, 6  }
 0x46d   :  { %12 = sbr.rel (!%p10_p4) target bundleno = 1 (0x1), region = 65 }

</bundles_post_ra>
